<compile_context>
chip_gen: v7x
topology: tpu7x:2x2x1
jax: 0.10.0
libtpu: 0.0.40
codegen_flags: <defaults>
</compile_context>

<pallas_src>
import functools
import math

import jax
import jax.numpy as jnp
from jax.experimental import pallas as pl
from jax.experimental.pallas import tpu as pltpu


# ----------------------------------------------------------------------------- helpers
def _gelu_tanh(x):
    c = jnp.float32(0.7978845608028654)  # sqrt(2/pi)
    return 0.5 * x * (1.0 + jnp.tanh(c * (x + 0.044715 * (x * x * x))))


def _layernorm(x, gamma_2d, beta_2d, eps=1e-5):
    mu = jnp.mean(x, axis=-1, keepdims=True)
    xc = x - mu
    var = jnp.mean(xc * xc, axis=-1, keepdims=True)
    return xc * jax.lax.rsqrt(var + jnp.float32(eps)) * gamma_2d + beta_2d


def _full_spec(arr):
    nd = arr.ndim
    return pl.BlockSpec(arr.shape, lambda i, _nd=nd: (0,) * _nd)


def _row_spec(S, E):
    return pl.BlockSpec((1, S, E), lambda i: (i, 0, 0))


# ----------------------------------------------------------------------------- kernel 1
def _attn_layer_kernel(*refs, num_heads, head_dim, has_mask, return_weights):
    it = iter(refs)
    x_ref = next(it)
    mask_ref = next(it) if has_mask else None
    g1_ref, b1_ref = next(it), next(it)
    wq_ref, bq_ref = next(it), next(it)
    wk_ref, bk_ref = next(it), next(it)
    wv_ref, bv_ref = next(it), next(it)
    wo_ref, bo_ref = next(it), next(it)
    y_ref = next(it)
    w_ref = next(it) if return_weights else None

    x = x_ref[0]                                    # [S, E]  (residual)
    xn = _layernorm(x, g1_ref[...], b1_ref[...])    # LayerNorm1

    dn = (((1,), (1,)), ((), ()))                   # contract feature dims: x @ W^T
    q = jax.lax.dot_general(xn, wq_ref[...], dn,
                            preferred_element_type=jnp.float32) + bq_ref[...]
    k = jax.lax.dot_general(xn, wk_ref[...], dn,
                            preferred_element_type=jnp.float32) + bk_ref[...]
    v = jax.lax.dot_general(xn, wv_ref[...], dn,
                            preferred_element_type=jnp.float32) + bv_ref[...]

    inv_sqrt_dk = jnp.float32(1.0 / math.sqrt(head_dim))
    proj = None
    for h in range(num_heads):                      # unrolled over heads
        sl = slice(h * head_dim, (h + 1) * head_dim)
        qh, kh, vh = q[:, sl], k[:, sl], v[:, sl]   # [S, D]
        s = jax.lax.dot_general(qh, kh, dn,
                                preferred_element_type=jnp.float32) * inv_sqrt_dk
        if has_mask:
            s = jnp.where(mask_ref[0, h] == 0, jnp.float32(-1e9), s)
        s = s - jnp.max(s, axis=-1, keepdims=True)  # stabilized softmax
        e = jnp.exp(s)
        p = e * pl.reciprocal(jnp.sum(e, axis=-1, keepdims=True), approx=False)
        if return_weights:
            w_ref[0, h] = p.astype(w_ref.dtype)
        oh = jnp.dot(p, vh, preferred_element_type=jnp.float32)          # [S, D]
        # fold head h directly into the output projection: oh @ Wo[:, hD:(h+1)D]^T
        contrib = jax.lax.dot_general(oh, wo_ref[:, sl], dn,
                                      preferred_element_type=jnp.float32)
        proj = contrib if proj is None else proj + contrib
    out = proj + bo_ref[...]
    y_ref[0] = (x + out).astype(y_ref.dtype)        # residual + dropout(.) [eval: id]


def attention_block(x, params, mask=None, return_attn_weights=True):
    B, S, E = x.shape
    H = int(params["num_heads"])
    D = E // H

    g1 = params["ln1_gamma"].reshape(1, E)
    b1 = params["ln1_beta"].reshape(1, E)
    wq, wk, wv, wo = params["wq"], params["wk"], params["wv"], params["wo"]
    bq = params["bq"].reshape(1, E)
    bk = params["bk"].reshape(1, E)
    bv = params["bv"].reshape(1, E)
    bo = params["bo"].reshape(1, E)

    has_mask = mask is not None
    inputs = [x]
    in_specs = [_row_spec(S, E)]
    if has_mask:
        # narrow int8 mask; "== 0" compare done in-kernel (no f32 mask fabricated)
        m = (jnp.broadcast_to(mask, (B, H, S, S)) != 0).astype(jnp.int8)
        inputs.append(m)
        in_specs.append(pl.BlockSpec((1, H, S, S), lambda i: (i, 0, 0, 0)))
    for w in (g1, b1, wq, bq, wk, bk, wv, bv, wo, bo):
        inputs.append(w)
        in_specs.append(_full_spec(w))

    y_shape = jax.ShapeDtypeStruct((B, S, E), x.dtype)
    y_spec = _row_spec(S, E)
    if return_attn_weights:
        out_shape = (y_shape, jax.ShapeDtypeStruct((B, H, S, S), jnp.float32))
        out_specs = (y_spec, pl.BlockSpec((1, H, S, S), lambda i: (i, 0, 0, 0)))
    else:
        out_shape = y_shape
        out_specs = y_spec

    kernel = functools.partial(_attn_layer_kernel, num_heads=H, head_dim=D,
                               has_mask=has_mask, return_weights=return_attn_weights)
    res = pl.pallas_call(
        kernel,
        out_shape=out_shape,
        grid_spec=pltpu.PrefetchScalarGridSpec(
            num_scalar_prefetch=0, grid=(B,),
            in_specs=in_specs, out_specs=out_specs),
        compiler_params=pltpu.CompilerParams(dimension_semantics=("parallel",)),
    )(*inputs)

    if return_attn_weights:
        y, w = res
        return y, w
    return res, None


# ----------------------------------------------------------------------------- kernel 2
def _gate_kernel(x_ref, ke_ref, wg_ref, bg_ref, o_ref):
    x = x_ref[0]                                                    # [S, E]
    logit = jnp.sum(x * wg_ref[...], axis=-1, keepdims=True) + bg_ref[...]
    gate = jax.nn.sigmoid(logit)                                    # [S, 1]
    o_ref[0] = (x + gate * ke_ref[0]).astype(o_ref.dtype)


def knowledge_gate_block(x, knowledge_embedding, params):
    B, S, E = x.shape
    ke = jnp.broadcast_to(knowledge_embedding, (B, S, E)).astype(x.dtype)
    wg = params["wg"].reshape(1, E)
    bg = params["bg"].reshape(1, 1)
    return pl.pallas_call(
        _gate_kernel,
        out_shape=jax.ShapeDtypeStruct((B, S, E), x.dtype),
        grid_spec=pltpu.PrefetchScalarGridSpec(
            num_scalar_prefetch=0, grid=(B,),
            in_specs=[_row_spec(S, E), _row_spec(S, E),
                      _full_spec(wg), _full_spec(bg)],
            out_specs=_row_spec(S, E)),
        compiler_params=pltpu.CompilerParams(dimension_semantics=("parallel",)),
    )(x, ke, wg, bg)


# ----------------------------------------------------------------------------- kernel 3
def _ffn_kernel(x_ref, g2_ref, b2_ref, w1_ref, bf1_ref, w2_ref, bf2_ref, o_ref):
    x = x_ref[0]                                                    # [S, E]
    xn = _layernorm(x, g2_ref[...], b2_ref[...])                    # LayerNorm2
    dn = (((1,), (1,)), ((), ()))
    h = jax.lax.dot_general(xn, w1_ref[...], dn,
                            preferred_element_type=jnp.float32) + bf1_ref[...]
    h = _gelu_tanh(h)
    y = jax.lax.dot_general(h, w2_ref[...], dn,
                            preferred_element_type=jnp.float32) + bf2_ref[...]
    o_ref[0] = (x + y).astype(o_ref.dtype)                          # residual


def ffn_block(x, params):
    B, S, E = x.shape
    Fdim = params["w1"].shape[0]
    g2 = params["ln2_gamma"].reshape(1, E)
    b2 = params["ln2_beta"].reshape(1, E)
    w1, w2 = params["w1"], params["w2"]
    bf1 = params["bf1"].reshape(1, Fdim)
    bf2 = params["bf2"].reshape(1, E)
    return pl.pallas_call(
        _ffn_kernel,
        out_shape=jax.ShapeDtypeStruct((B, S, E), x.dtype),
        grid_spec=pltpu.PrefetchScalarGridSpec(
            num_scalar_prefetch=0, grid=(B,),
            in_specs=[_row_spec(S, E), _full_spec(g2), _full_spec(b2),
                      _full_spec(w1), _full_spec(bf1),
                      _full_spec(w2), _full_spec(bf2)],
            out_specs=_row_spec(S, E)),
        compiler_params=pltpu.CompilerParams(dimension_semantics=("parallel",)),
    )(x, g2, b2, w1, bf1, w2, bf2)


# ----------------------------------------------------------------------------- full layer
def knowledge_aware_transformer_layer(x, params, knowledge_embedding=None,
                                      mask=None, return_attn_weights=True):
    y, attn_w = attention_block(x, params, mask=mask,
                                return_attn_weights=return_attn_weights)
    if knowledge_embedding is not None:
        y = knowledge_gate_block(y, knowledge_embedding, params)
    y = ffn_block(y, params)
    return y, attn_w


# ----------------------------------------------------------------------------- pure-JAX reference
def _reference_layer(x, params, knowledge_embedding=None, mask=None):
    B, S, E = x.shape
    H = int(params["num_heads"])
    D = E // H

    def ln(z, g, b):
        mu = jnp.mean(z, -1, keepdims=True)
        var = jnp.mean((z - mu) ** 2, -1, keepdims=True)
        return (z - mu) / jnp.sqrt(var + 1e-5) * g + b

    resid = x
    xn = ln(x, params["ln1_gamma"], params["ln1_beta"])
    q = xn @ params["wq"].T + params["bq"]
    k = xn @ params["wk"].T + params["bk"]
    v = xn @ params["wv"].T + params["bv"]

    def split(t):
        return t.reshape(B, S, H, D).transpose(0, 2, 1, 3)

    qh, kh, vh = split(q), split(k), split(v)
    scores = jnp.einsum("bhqd,bhkd->bhqk", qh, kh) / math.sqrt(D)
    if mask is not None:
        scores = jnp.where(mask == 0, -1e9, scores)
    w = jax.nn.softmax(scores, axis=-1)
    ao = jnp.einsum("bhqk,bhkd->bhqd", w, vh).transpose(0, 2, 1, 3).reshape(B, S, E)
    x1 = resid + (ao @ params["wo"].T + params["bo"])

    if knowledge_embedding is not None:
        gate = jax.nn.sigmoid(x1 @ params["wg"].T + params["bg"])
        x1 = x1 + gate * knowledge_embedding

    resid2 = x1
    xn2 = ln(x1, params["ln2_gamma"], params["ln2_beta"])
    h = jax.nn.gelu(xn2 @ params["w1"].T + params["bf1"], approximate=True)
    ffn = h @ params["w2"].T + params["bf2"]
    return resid2 + ffn, w


# ----------------------------------------------------------------------------- demo / self-test
if __name__ == "__main__":
    B, S, E, H, Fdim = 2, 16, 128, 4, 256

    key = jax.random.PRNGKey(0)
    ks = jax.random.split(key, 24)

    def rnd(k, shape, scale=1.0):
        return jax.random.normal(k, shape, dtype=jnp.float32) * scale

    params = {
        "num_heads": H,
        "ln1_gamma": 1.0 + 0.1 * rnd(ks[0], (E,)),
        "ln1_beta": 0.1 * rnd(ks[1], (E,)),
        "wq": rnd(ks[2], (E, E), 0.05), "bq": 0.05 * rnd(ks[3], (E,)),
        "wk": rnd(ks[4], (E, E), 0.05), "bk": 0.05 * rnd(ks[5], (E,)),
        "wv": rnd(ks[6], (E, E), 0.05), "bv": 0.05 * rnd(ks[7], (E,)),
        "wo": rnd(ks[8], (E, E), 0.05), "bo": 0.05 * rnd(ks[9], (E,)),
        "wg": rnd(ks[10], (1, E), 0.05), "bg": 0.05 * rnd(ks[11], (1,)),
        "ln2_gamma": 1.0 + 0.1 * rnd(ks[12], (E,)),
        "ln2_beta": 0.1 * rnd(ks[13], (E,)),
        "w1": rnd(ks[14], (Fdim, E), 0.05), "bf1": 0.05 * rnd(ks[15], (Fdim,)),
        "w2": rnd(ks[16], (E, Fdim), 0.05), "bf2": 0.05 * rnd(ks[17], (E,)),
    }
    x = rnd(ks[18], (B, S, E))
    knowledge = rnd(ks[19], (B, S, E), 0.5)

    # full module semantics (attention weights returned, no mask -> no mask DMA)
    y, attn_w = knowledge_aware_transformer_layer(
        x, params, knowledge_embedding=knowledge, mask=None)
    jax.block_until_ready((y, attn_w))

    y_ref, w_ref = _reference_layer(x, params, knowledge_embedding=knowledge, mask=None)
    assert y.shape == (B, S, E) and attn_w.shape == (B, H, S, S)
    assert jnp.allclose(y, y_ref, atol=5e-4, rtol=5e-4)
    assert jnp.allclose(attn_w, w_ref, atol=5e-4, rtol=5e-4)

    # optimized path: skip the O(B*H*S^2) attention-weights writeback entirely
    y2, w2 = knowledge_aware_transformer_layer(
        x, params, knowledge_embedding=knowledge, mask=None,
        return_attn_weights=False)
    jax.block_until_ready(y2)
    assert w2 is None
    assert jnp.allclose(y2, y, atol=1e-5, rtol=1e-5)

    print("KERNEL_OK")
</pallas_src>

<mosaic_0001>
module attributes {stable_mosaic.version = 11 : i64} {
  func.func @_attn_layer_kernel(%arg0: i32, %arg1: memref<1x16x128xf32, #tpu.memory_space<vmem>>, %arg2: memref<1x128xf32, #tpu.memory_space<vmem>>, %arg3: memref<1x128xf32, #tpu.memory_space<vmem>>, %arg4: memref<128x128xf32, #tpu.memory_space<vmem>>, %arg5: memref<1x128xf32, #tpu.memory_space<vmem>>, %arg6: memref<128x128xf32, #tpu.memory_space<vmem>>, %arg7: memref<1x128xf32, #tpu.memory_space<vmem>>, %arg8: memref<128x128xf32, #tpu.memory_space<vmem>>, %arg9: memref<1x128xf32, #tpu.memory_space<vmem>>, %arg10: memref<128x128xf32, #tpu.memory_space<vmem>>, %arg11: memref<1x128xf32, #tpu.memory_space<vmem>>, %arg12: memref<1x16x128xf32, #tpu.memory_space<vmem>>, %arg13: memref<1x4x16x16xf32, #tpu.memory_space<vmem>>) attributes {dimension_semantics = [#tpu.dimension_semantics<parallel>], iteration_bounds = array<i64: 2>, scalar_prefetch = 0 : i64, scratch_operands = 0 : i64, tpu.core_type = #tpu.core_type<tc>, window_params = [{transform_indices = @transform_0, window_bounds = array<i64: 1, 16, 128>}, {pipeline_mode = #tpu.pipeline_mode<synchronous>, transform_indices = @transform_1, window_bounds = array<i64: 1, 128>}, {pipeline_mode = #tpu.pipeline_mode<synchronous>, transform_indices = @transform_2, window_bounds = array<i64: 1, 128>}, {pipeline_mode = #tpu.pipeline_mode<synchronous>, transform_indices = @transform_3, window_bounds = array<i64: 128, 128>}, {pipeline_mode = #tpu.pipeline_mode<synchronous>, transform_indices = @transform_4, window_bounds = array<i64: 1, 128>}, {pipeline_mode = #tpu.pipeline_mode<synchronous>, transform_indices = @transform_5, window_bounds = array<i64: 128, 128>}, {pipeline_mode = #tpu.pipeline_mode<synchronous>, transform_indices = @transform_6, window_bounds = array<i64: 1, 128>}, {pipeline_mode = #tpu.pipeline_mode<synchronous>, transform_indices = @transform_7, window_bounds = array<i64: 128, 128>}, {pipeline_mode = #tpu.pipeline_mode<synchronous>, transform_indices = @transform_8, window_bounds = array<i64: 1, 128>}, {pipeline_mode = #tpu.pipeline_mode<synchronous>, transform_indices = @transform_9, window_bounds = array<i64: 128, 128>}, {pipeline_mode = #tpu.pipeline_mode<synchronous>, transform_indices = @transform_10, window_bounds = array<i64: 1, 128>}, {transform_indices = @transform_11, window_bounds = array<i64: 1, 16, 128>}, {transform_indices = @transform_12, window_bounds = array<i64: 1, 4, 16, 16>}]} {
    %c0 = arith.constant 0 : index
    %c0_0 = arith.constant 0 : index
    %c0_1 = arith.constant 0 : index
    %0 = vector.load %arg1[%c0, %c0_0, %c0_1] : memref<1x16x128xf32, #tpu.memory_space<vmem>>, vector<1x16x128xf32>
    %1 = vector.shape_cast %0 : vector<1x16x128xf32> to vector<16x128xf32>
    %c0_2 = arith.constant 0 : index
    %c0_3 = arith.constant 0 : index
    %2 = vector.load %arg2[%c0_2, %c0_3] : memref<1x128xf32, #tpu.memory_space<vmem>>, vector<1x128xf32>
    %c0_4 = arith.constant 0 : index
    %c0_5 = arith.constant 0 : index
    %3 = vector.load %arg3[%c0_4, %c0_5] : memref<1x128xf32, #tpu.memory_space<vmem>>, vector<1x128xf32>
    %cst = arith.constant dense<0.000000e+00> : vector<16xf32>
    %4 = vector.multi_reduction <add>, %1, %cst [1] : vector<16x128xf32> to vector<16xf32>
    %5 = vector.shape_cast %4 : vector<16xf32> to vector<16x1xf32>
    %cst_6 = arith.constant 1.280000e+02 : f32
    %6 = vector.broadcast %cst_6 : f32 to vector<16x1xf32>
    %7 = arith.divf %5, %6 : vector<16x1xf32>
    %8 = vector.broadcast %7 : vector<16x1xf32> to vector<16x128xf32>
    %9 = arith.subf %1, %8 : vector<16x128xf32>
    %10 = arith.mulf %9, %9 : vector<16x128xf32>
    %cst_7 = arith.constant dense<0.000000e+00> : vector<16xf32>
    %11 = vector.multi_reduction <add>, %10, %cst_7 [1] : vector<16x128xf32> to vector<16xf32>
    %12 = vector.shape_cast %11 : vector<16xf32> to vector<16x1xf32>
    %cst_8 = arith.constant 1.280000e+02 : f32
    %13 = vector.broadcast %cst_8 : f32 to vector<16x1xf32>
    %14 = arith.divf %12, %13 : vector<16x1xf32>
    %cst_9 = arith.constant 9.99999974E-6 : f32
    %15 = vector.broadcast %cst_9 : f32 to vector<16x1xf32>
    %16 = arith.addf %14, %15 : vector<16x1xf32>
    %17 = math.rsqrt %16 : vector<16x1xf32>
    %18 = vector.broadcast %17 : vector<16x1xf32> to vector<16x128xf32>
    %19 = arith.mulf %9, %18 : vector<16x128xf32>
    %20 = vector.broadcast %2 : vector<1x128xf32> to vector<16x128xf32>
    %21 = arith.mulf %19, %20 : vector<16x128xf32>
    %22 = vector.broadcast %3 : vector<1x128xf32> to vector<16x128xf32>
    %23 = arith.addf %21, %22 : vector<16x128xf32>
    %c0_10 = arith.constant 0 : index
    %c0_11 = arith.constant 0 : index
    %24 = vector.load %arg4[%c0_10, %c0_11] : memref<128x128xf32, #tpu.memory_space<vmem>>, vector<128x128xf32>
    %cst_12 = arith.constant dense<0.000000e+00> : vector<16x128xf32>
    %25 = tpu.matmul %23, %24, %cst_12 {dimension_numbers = #tpu.dot_dimension_numbers<[1], [1], [0], [0], [0, 0, 1, 0], [], []>} : vector<16x128xf32>, vector<128x128xf32>, vector<16x128xf32> -> vector<16x128xf32>
    %c0_13 = arith.constant 0 : index
    %c0_14 = arith.constant 0 : index
    %26 = vector.load %arg5[%c0_13, %c0_14] : memref<1x128xf32, #tpu.memory_space<vmem>>, vector<1x128xf32>
    %27 = vector.broadcast %26 : vector<1x128xf32> to vector<16x128xf32>
    %28 = arith.addf %25, %27 : vector<16x128xf32>
    %c0_15 = arith.constant 0 : index
    %c0_16 = arith.constant 0 : index
    %29 = vector.load %arg6[%c0_15, %c0_16] : memref<128x128xf32, #tpu.memory_space<vmem>>, vector<128x128xf32>
    %cst_17 = arith.constant dense<0.000000e+00> : vector<16x128xf32>
    %30 = tpu.matmul %23, %29, %cst_17 {dimension_numbers = #tpu.dot_dimension_numbers<[1], [1], [0], [0], [0, 0, 1, 0], [], []>} : vector<16x128xf32>, vector<128x128xf32>, vector<16x128xf32> -> vector<16x128xf32>
    %c0_18 = arith.constant 0 : index
    %c0_19 = arith.constant 0 : index
    %31 = vector.load %arg7[%c0_18, %c0_19] : memref<1x128xf32, #tpu.memory_space<vmem>>, vector<1x128xf32>
    %32 = vector.broadcast %31 : vector<1x128xf32> to vector<16x128xf32>
    %33 = arith.addf %30, %32 : vector<16x128xf32>
    %c0_20 = arith.constant 0 : index
    %c0_21 = arith.constant 0 : index
    %34 = vector.load %arg8[%c0_20, %c0_21] : memref<128x128xf32, #tpu.memory_space<vmem>>, vector<128x128xf32>
    %cst_22 = arith.constant dense<0.000000e+00> : vector<16x128xf32>
    %35 = tpu.matmul %23, %34, %cst_22 {dimension_numbers = #tpu.dot_dimension_numbers<[1], [1], [0], [0], [0, 0, 1, 0], [], []>} : vector<16x128xf32>, vector<128x128xf32>, vector<16x128xf32> -> vector<16x128xf32>
    %c0_23 = arith.constant 0 : index
    %c0_24 = arith.constant 0 : index
    %36 = vector.load %arg9[%c0_23, %c0_24] : memref<1x128xf32, #tpu.memory_space<vmem>>, vector<1x128xf32>
    %37 = vector.broadcast %36 : vector<1x128xf32> to vector<16x128xf32>
    %38 = arith.addf %35, %37 : vector<16x128xf32>
    %39 = vector.extract_strided_slice %28 {offsets = [0, 0], sizes = [16, 32], strides = [1, 1]} : vector<16x128xf32> to vector<16x32xf32>
    %40 = vector.extract_strided_slice %33 {offsets = [0, 0], sizes = [16, 32], strides = [1, 1]} : vector<16x128xf32> to vector<16x32xf32>
    %41 = vector.extract_strided_slice %38 {offsets = [0, 0], sizes = [16, 32], strides = [1, 1]} : vector<16x128xf32> to vector<16x32xf32>
    %cst_25 = arith.constant dense<0.000000e+00> : vector<16x16xf32>
    %42 = tpu.matmul %39, %40, %cst_25 {dimension_numbers = #tpu.dot_dimension_numbers<[1], [1], [0], [0], [0, 0, 1, 0], [], []>} : vector<16x32xf32>, vector<16x32xf32>, vector<16x16xf32> -> vector<16x16xf32>
    %cst_26 = arith.constant 0.176776692 : f32
    %43 = vector.broadcast %cst_26 : f32 to vector<16x16xf32>
    %44 = arith.mulf %42, %43 : vector<16x16xf32>
    %cst_27 = arith.constant dense<0xFF800000> : vector<16xf32>
    %45 = vector.multi_reduction <maximumf>, %44, %cst_27 [1] : vector<16x16xf32> to vector<16xf32>
    %46 = vector.shape_cast %45 : vector<16xf32> to vector<16x1xf32>
    %47 = vector.broadcast %46 : vector<16x1xf32> to vector<16x16xf32>
    %48 = arith.subf %44, %47 : vector<16x16xf32>
    %49 = math.exp %48 : vector<16x16xf32>
    %cst_28 = arith.constant dense<0.000000e+00> : vector<16xf32>
    %50 = vector.multi_reduction <add>, %49, %cst_28 [1] : vector<16x16xf32> to vector<16xf32>
    %51 = vector.shape_cast %50 : vector<16xf32> to vector<16x1xf32>
    %52 = tpu.reciprocal %51 : vector<16x1xf32> -> vector<16x1xf32>
    %53 = vector.broadcast %52 : vector<16x1xf32> to vector<16x16xf32>
    %54 = arith.mulf %49, %53 : vector<16x16xf32>
    %c0_29 = arith.constant 0 : index
    %c0_30 = arith.constant 0 : index
    %c0_31 = arith.constant 0 : index
    %c0_32 = arith.constant 0 : index
    %55 = vector.load %arg13[%c0_29, %c0_30, %c0_31, %c0_32] : memref<1x4x16x16xf32, #tpu.memory_space<vmem>>, vector<1x1x16x16xf32>
    %56 = vector.shape_cast %55 : vector<1x1x16x16xf32> to vector<16x16xf32>
    %57 = vector.shape_cast %54 : vector<16x16xf32> to vector<1x1x16x16xf32>
    tpu.vector_store %arg13[%c0_29, %c0_30, %c0_31, %c0_32], %57 {strides = array<i32>} : memref<1x4x16x16xf32, #tpu.memory_space<vmem>>, vector<1x1x16x16xf32>,
    %cst_33 = arith.constant dense<0.000000e+00> : vector<16x32xf32>
    %58 = tpu.matmul %54, %41, %cst_33 {dimension_numbers = #tpu.dot_dimension_numbers<[1], [0], [0], [1], [0, 0, 1, 1], [], []>} : vector<16x16xf32>, vector<16x32xf32>, vector<16x32xf32> -> vector<16x32xf32>
    %c0_34 = arith.constant 0 : index
    %c0_35 = arith.constant 0 : index
    %59 = vector.load %arg10[%c0_34, %c0_35] : memref<128x128xf32, #tpu.memory_space<vmem>>, vector<128x32xf32>
    %cst_36 = arith.constant dense<0.000000e+00> : vector<16x128xf32>
    %60 = tpu.matmul %58, %59, %cst_36 {dimension_numbers = #tpu.dot_dimension_numbers<[1], [1], [0], [0], [0, 0, 1, 0], [], []>} : vector<16x32xf32>, vector<128x32xf32>, vector<16x128xf32> -> vector<16x128xf32>
    %61 = vector.extract_strided_slice %28 {offsets = [0, 32], sizes = [16, 32], strides = [1, 1]} : vector<16x128xf32> to vector<16x32xf32>
    %62 = vector.extract_strided_slice %33 {offsets = [0, 32], sizes = [16, 32], strides = [1, 1]} : vector<16x128xf32> to vector<16x32xf32>
    %63 = vector.extract_strided_slice %38 {offsets = [0, 32], sizes = [16, 32], strides = [1, 1]} : vector<16x128xf32> to vector<16x32xf32>
    %cst_37 = arith.constant dense<0.000000e+00> : vector<16x16xf32>
    %64 = tpu.matmul %61, %62, %cst_37 {dimension_numbers = #tpu.dot_dimension_numbers<[1], [1], [0], [0], [0, 0, 1, 0], [], []>} : vector<16x32xf32>, vector<16x32xf32>, vector<16x16xf32> -> vector<16x16xf32>
    %cst_38 = arith.constant 0.176776692 : f32
    %65 = vector.broadcast %cst_38 : f32 to vector<16x16xf32>
    %66 = arith.mulf %64, %65 : vector<16x16xf32>
    %cst_39 = arith.constant dense<0xFF800000> : vector<16xf32>
    %67 = vector.multi_reduction <maximumf>, %66, %cst_39 [1] : vector<16x16xf32> to vector<16xf32>
    %68 = vector.shape_cast %67 : vector<16xf32> to vector<16x1xf32>
    %69 = vector.broadcast %68 : vector<16x1xf32> to vector<16x16xf32>
    %70 = arith.subf %66, %69 : vector<16x16xf32>
    %71 = math.exp %70 : vector<16x16xf32>
    %cst_40 = arith.constant dense<0.000000e+00> : vector<16xf32>
    %72 = vector.multi_reduction <add>, %71, %cst_40 [1] : vector<16x16xf32> to vector<16xf32>
    %73 = vector.shape_cast %72 : vector<16xf32> to vector<16x1xf32>
    %74 = tpu.reciprocal %73 : vector<16x1xf32> -> vector<16x1xf32>
    %75 = vector.broadcast %74 : vector<16x1xf32> to vector<16x16xf32>
    %76 = arith.mulf %71, %75 : vector<16x16xf32>
    %c0_41 = arith.constant 0 : index
    %c1 = arith.constant 1 : index
    %c0_42 = arith.constant 0 : index
    %c0_43 = arith.constant 0 : index
    %77 = vector.load %arg13[%c0_41, %c1, %c0_42, %c0_43] : memref<1x4x16x16xf32, #tpu.memory_space<vmem>>, vector<1x1x16x16xf32>
    %78 = vector.shape_cast %77 : vector<1x1x16x16xf32> to vector<16x16xf32>
    %79 = vector.shape_cast %76 : vector<16x16xf32> to vector<1x1x16x16xf32>
    tpu.vector_store %arg13[%c0_41, %c1, %c0_42, %c0_43], %79 {strides = array<i32>} : memref<1x4x16x16xf32, #tpu.memory_space<vmem>>, vector<1x1x16x16xf32>,
    %cst_44 = arith.constant dense<0.000000e+00> : vector<16x32xf32>
    %80 = tpu.matmul %76, %63, %cst_44 {dimension_numbers = #tpu.dot_dimension_numbers<[1], [0], [0], [1], [0, 0, 1, 1], [], []>} : vector<16x16xf32>, vector<16x32xf32>, vector<16x32xf32> -> vector<16x32xf32>
    %c0_45 = arith.constant 0 : index
    %c32 = arith.constant 32 : index
    %81 = vector.load %arg10[%c0_45, %c32] : memref<128x128xf32, #tpu.memory_space<vmem>>, vector<128x32xf32>
    %cst_46 = arith.constant dense<0.000000e+00> : vector<16x128xf32>
    %82 = tpu.matmul %80, %81, %cst_46 {dimension_numbers = #tpu.dot_dimension_numbers<[1], [1], [0], [0], [0, 0, 1, 0], [], []>} : vector<16x32xf32>, vector<128x32xf32>, vector<16x128xf32> -> vector<16x128xf32>
    %83 = arith.addf %60, %82 : vector<16x128xf32>
    %84 = vector.extract_strided_slice %28 {offsets = [0, 64], sizes = [16, 32], strides = [1, 1]} : vector<16x128xf32> to vector<16x32xf32>
    %85 = vector.extract_strided_slice %33 {offsets = [0, 64], sizes = [16, 32], strides = [1, 1]} : vector<16x128xf32> to vector<16x32xf32>
    %86 = vector.extract_strided_slice %38 {offsets = [0, 64], sizes = [16, 32], strides = [1, 1]} : vector<16x128xf32> to vector<16x32xf32>
    %cst_47 = arith.constant dense<0.000000e+00> : vector<16x16xf32>
    %87 = tpu.matmul %84, %85, %cst_47 {dimension_numbers = #tpu.dot_dimension_numbers<[1], [1], [0], [0], [0, 0, 1, 0], [], []>} : vector<16x32xf32>, vector<16x32xf32>, vector<16x16xf32> -> vector<16x16xf32>
    %cst_48 = arith.constant 0.176776692 : f32
    %88 = vector.broadcast %cst_48 : f32 to vector<16x16xf32>
    %89 = arith.mulf %87, %88 : vector<16x16xf32>
    %cst_49 = arith.constant dense<0xFF800000> : vector<16xf32>
    %90 = vector.multi_reduction <maximumf>, %89, %cst_49 [1] : vector<16x16xf32> to vector<16xf32>
    %91 = vector.shape_cast %90 : vector<16xf32> to vector<16x1xf32>
    %92 = vector.broadcast %91 : vector<16x1xf32> to vector<16x16xf32>
    %93 = arith.subf %89, %92 : vector<16x16xf32>
    %94 = math.exp %93 : vector<16x16xf32>
    %cst_50 = arith.constant dense<0.000000e+00> : vector<16xf32>
    %95 = vector.multi_reduction <add>, %94, %cst_50 [1] : vector<16x16xf32> to vector<16xf32>
    %96 = vector.shape_cast %95 : vector<16xf32> to vector<16x1xf32>
    %97 = tpu.reciprocal %96 : vector<16x1xf32> -> vector<16x1xf32>
    %98 = vector.broadcast %97 : vector<16x1xf32> to vector<16x16xf32>
    %99 = arith.mulf %94, %98 : vector<16x16xf32>
    %c0_51 = arith.constant 0 : index
    %c2 = arith.constant 2 : index
    %c0_52 = arith.constant 0 : index
    %c0_53 = arith.constant 0 : index
    %100 = vector.load %arg13[%c0_51, %c2, %c0_52, %c0_53] : memref<1x4x16x16xf32, #tpu.memory_space<vmem>>, vector<1x1x16x16xf32>
    %101 = vector.shape_cast %100 : vector<1x1x16x16xf32> to vector<16x16xf32>
    %102 = vector.shape_cast %99 : vector<16x16xf32> to vector<1x1x16x16xf32>
    tpu.vector_store %arg13[%c0_51, %c2, %c0_52, %c0_53], %102 {strides = array<i32>} : memref<1x4x16x16xf32, #tpu.memory_space<vmem>>, vector<1x1x16x16xf32>,
    %cst_54 = arith.constant dense<0.000000e+00> : vector<16x32xf32>
    %103 = tpu.matmul %99, %86, %cst_54 {dimension_numbers = #tpu.dot_dimension_numbers<[1], [0], [0], [1], [0, 0, 1, 1], [], []>} : vector<16x16xf32>, vector<16x32xf32>, vector<16x32xf32> -> vector<16x32xf32>
    %c0_55 = arith.constant 0 : index
    %c64 = arith.constant 64 : index
    %104 = vector.load %arg10[%c0_55, %c64] : memref<128x128xf32, #tpu.memory_space<vmem>>, vector<128x32xf32>
    %cst_56 = arith.constant dense<0.000000e+00> : vector<16x128xf32>
    %105 = tpu.matmul %103, %104, %cst_56 {dimension_numbers = #tpu.dot_dimension_numbers<[1], [1], [0], [0], [0, 0, 1, 0], [], []>} : vector<16x32xf32>, vector<128x32xf32>, vector<16x128xf32> -> vector<16x128xf32>
    %106 = arith.addf %83, %105 : vector<16x128xf32>
    %107 = vector.extract_strided_slice %28 {offsets = [0, 96], sizes = [16, 32], strides = [1, 1]} : vector<16x128xf32> to vector<16x32xf32>
    %108 = vector.extract_strided_slice %33 {offsets = [0, 96], sizes = [16, 32], strides = [1, 1]} : vector<16x128xf32> to vector<16x32xf32>
    %109 = vector.extract_strided_slice %38 {offsets = [0, 96], sizes = [16, 32], strides = [1, 1]} : vector<16x128xf32> to vector<16x32xf32>
    %cst_57 = arith.constant dense<0.000000e+00> : vector<16x16xf32>
    %110 = tpu.matmul %107, %108, %cst_57 {dimension_numbers = #tpu.dot_dimension_numbers<[1], [1], [0], [0], [0, 0, 1, 0], [], []>} : vector<16x32xf32>, vector<16x32xf32>, vector<16x16xf32> -> vector<16x16xf32>
    %cst_58 = arith.constant 0.176776692 : f32
    %111 = vector.broadcast %cst_58 : f32 to vector<16x16xf32>
    %112 = arith.mulf %110, %111 : vector<16x16xf32>
    %cst_59 = arith.constant dense<0xFF800000> : vector<16xf32>
    %113 = vector.multi_reduction <maximumf>, %112, %cst_59 [1] : vector<16x16xf32> to vector<16xf32>
    %114 = vector.shape_cast %113 : vector<16xf32> to vector<16x1xf32>
    %115 = vector.broadcast %114 : vector<16x1xf32> to vector<16x16xf32>
    %116 = arith.subf %112, %115 : vector<16x16xf32>
    %117 = math.exp %116 : vector<16x16xf32>
    %cst_60 = arith.constant dense<0.000000e+00> : vector<16xf32>
    %118 = vector.multi_reduction <add>, %117, %cst_60 [1] : vector<16x16xf32> to vector<16xf32>
    %119 = vector.shape_cast %118 : vector<16xf32> to vector<16x1xf32>
    %120 = tpu.reciprocal %119 : vector<16x1xf32> -> vector<16x1xf32>
    %121 = vector.broadcast %120 : vector<16x1xf32> to vector<16x16xf32>
    %122 = arith.mulf %117, %121 : vector<16x16xf32>
    %c0_61 = arith.constant 0 : index
    %c3 = arith.constant 3 : index
    %c0_62 = arith.constant 0 : index
    %c0_63 = arith.constant 0 : index
    %123 = vector.load %arg13[%c0_61, %c3, %c0_62, %c0_63] : memref<1x4x16x16xf32, #tpu.memory_space<vmem>>, vector<1x1x16x16xf32>
    %124 = vector.shape_cast %123 : vector<1x1x16x16xf32> to vector<16x16xf32>
    %125 = vector.shape_cast %122 : vector<16x16xf32> to vector<1x1x16x16xf32>
    tpu.vector_store %arg13[%c0_61, %c3, %c0_62, %c0_63], %125 {strides = array<i32>} : memref<1x4x16x16xf32, #tpu.memory_space<vmem>>, vector<1x1x16x16xf32>,
    %cst_64 = arith.constant dense<0.000000e+00> : vector<16x32xf32>
    %126 = tpu.matmul %122, %109, %cst_64 {dimension_numbers = #tpu.dot_dimension_numbers<[1], [0], [0], [1], [0, 0, 1, 1], [], []>} : vector<16x16xf32>, vector<16x32xf32>, vector<16x32xf32> -> vector<16x32xf32>
    %c0_65 = arith.constant 0 : index
    %c96 = arith.constant 96 : index
    %127 = vector.load %arg10[%c0_65, %c96] : memref<128x128xf32, #tpu.memory_space<vmem>>, vector<128x32xf32>
    %cst_66 = arith.constant dense<0.000000e+00> : vector<16x128xf32>
    %128 = tpu.matmul %126, %127, %cst_66 {dimension_numbers = #tpu.dot_dimension_numbers<[1], [1], [0], [0], [0, 0, 1, 0], [], []>} : vector<16x32xf32>, vector<128x32xf32>, vector<16x128xf32> -> vector<16x128xf32>
    %129 = arith.addf %106, %128 : vector<16x128xf32>
    %c0_67 = arith.constant 0 : index
    %c0_68 = arith.constant 0 : index
    %130 = vector.load %arg11[%c0_67, %c0_68] : memref<1x128xf32, #tpu.memory_space<vmem>>, vector<1x128xf32>
    %131 = vector.broadcast %130 : vector<1x128xf32> to vector<16x128xf32>
    %132 = arith.addf %129, %131 : vector<16x128xf32>
    %133 = arith.addf %1, %132 : vector<16x128xf32>
    %c0_69 = arith.constant 0 : index
    %c0_70 = arith.constant 0 : index
    %c0_71 = arith.constant 0 : index
    %134 = vector.load %arg12[%c0_69, %c0_70, %c0_71] : memref<1x16x128xf32, #tpu.memory_space<vmem>>, vector<1x16x128xf32>
    %135 = vector.shape_cast %134 : vector<1x16x128xf32> to vector<16x128xf32>
    %136 = vector.shape_cast %133 : vector<16x128xf32> to vector<1x16x128xf32>
    tpu.vector_store %arg12[%c0_69, %c0_70, %c0_71], %136 {strides = array<i32>} : memref<1x16x128xf32, #tpu.memory_space<vmem>>, vector<1x16x128xf32>,
    return
  }
  func.func @transform_0(%arg0: i32) -> (i32, i32, i32) {
    %c0_i32 = arith.constant 0 : i32
    %c0_i32_0 = arith.constant 0 : i32
    %c0_i32_1 = arith.constant 0 : i32
    return %arg0, %c0_i32, %c0_i32_0 : i32, i32, i32
  }
  func.func @transform_1(%arg0: i32) -> (i32, i32) {
    %c0_i32 = arith.constant 0 : i32
    %c0_i32_0 = arith.constant 0 : i32
    %c0_i32_1 = arith.constant 0 : i32
    return %c0_i32, %c0_i32_0 : i32, i32
  }
  func.func @transform_2(%arg0: i32) -> (i32, i32) {
    %c0_i32 = arith.constant 0 : i32
    %c0_i32_0 = arith.constant 0 : i32
    %c0_i32_1 = arith.constant 0 : i32
    return %c0_i32, %c0_i32_0 : i32, i32
  }
  func.func @transform_3(%arg0: i32) -> (i32, i32) {
    %c0_i32 = arith.constant 0 : i32
    %c0_i32_0 = arith.constant 0 : i32
    %c0_i32_1 = arith.constant 0 : i32
    return %c0_i32, %c0_i32_0 : i32, i32
  }
  func.func @transform_4(%arg0: i32) -> (i32, i32) {
    %c0_i32 = arith.constant 0 : i32
    %c0_i32_0 = arith.constant 0 : i32
    %c0_i32_1 = arith.constant 0 : i32
    return %c0_i32, %c0_i32_0 : i32, i32
  }
  func.func @transform_5(%arg0: i32) -> (i32, i32) {
    %c0_i32 = arith.constant 0 : i32
    %c0_i32_0 = arith.constant 0 : i32
    %c0_i32_1 = arith.constant 0 : i32
    return %c0_i32, %c0_i32_0 : i32, i32
  }
  func.func @transform_6(%arg0: i32) -> (i32, i32) {
    %c0_i32 = arith.constant 0 : i32
    %c0_i32_0 = arith.constant 0 : i32
    %c0_i32_1 = arith.constant 0 : i32
    return %c0_i32, %c0_i32_0 : i32, i32
  }
  func.func @transform_7(%arg0: i32) -> (i32, i32) {
    %c0_i32 = arith.constant 0 : i32
    %c0_i32_0 = arith.constant 0 : i32
    %c0_i32_1 = arith.constant 0 : i32
    return %c0_i32, %c0_i32_0 : i32, i32
  }
  func.func @transform_8(%arg0: i32) -> (i32, i32) {
    %c0_i32 = arith.constant 0 : i32
    %c0_i32_0 = arith.constant 0 : i32
    %c0_i32_1 = arith.constant 0 : i32
    return %c0_i32, %c0_i32_0 : i32, i32
  }
  func.func @transform_9(%arg0: i32) -> (i32, i32) {
    %c0_i32 = arith.constant 0 : i32
    %c0_i32_0 = arith.constant 0 : i32
    %c0_i32_1 = arith.constant 0 : i32
    return %c0_i32, %c0_i32_0 : i32, i32
  }
  func.func @transform_10(%arg0: i32) -> (i32, i32) {
    %c0_i32 = arith.constant 0 : i32
    %c0_i32_0 = arith.constant 0 : i32
    %c0_i32_1 = arith.constant 0 : i32
    return %c0_i32, %c0_i32_0 : i32, i32
  }
  func.func @transform_11(%arg0: i32) -> (i32, i32, i32) {
    %c0_i32 = arith.constant 0 : i32
    %c0_i32_0 = arith.constant 0 : i32
    %c0_i32_1 = arith.constant 0 : i32
    return %arg0, %c0_i32, %c0_i32_0 : i32, i32, i32
  }
  func.func @transform_12(%arg0: i32) -> (i32, i32, i32, i32) {
    %c0_i32 = arith.constant 0 : i32
    %c0_i32_0 = arith.constant 0 : i32
    %c0_i32_1 = arith.constant 0 : i32
    %c0_i32_2 = arith.constant 0 : i32
    return %arg0, %c0_i32, %c0_i32_0, %c0_i32_1 : i32, i32, i32, i32
  }
}

</mosaic_0001>

<bundles_post_ra>
// kernel: tpu_custom_call.1
= control target key start
LH: loop header
LB: loop body
LE: loop exit
PB: predicated region body
PF: predicated region fallthrough
CT: control target
= control target key end

     0   :  { %s4811_s0 = inlined_call_operand.hbm [shape: f32[2,16,128], index: 0, kind: input, shape index: {}]   ;;  %s4812_s1 = inlined_call_operand.vmem [shape: f32[1,128], index: 1, kind: input, shape index: {}]   ;;  %s4813_s2 = inlined_call_operand.vmem [shape: f32[1,128], index: 2, kind: input, shape index: {}]   ;;  %s4814_s3 = inlined_call_operand.hbm [shape: f32[128,128], index: 3, kind: input, shape index: {}]   ;;  %s4815_s4 = inlined_call_operand.vmem [shape: f32[1,128], index: 4, kind: input, shape index: {}]   ;;  %s4816_s5 = inlined_call_operand.hbm [shape: f32[128,128], index: 5, kind: input, shape index: {}]   ;;  %s4817_s6 = inlined_call_operand.vmem [shape: f32[1,128], index: 6, kind: input, shape index: {}]   ;;  %s4818_s7 = inlined_call_operand.hbm [shape: f32[128,128], index: 7, kind: input, shape index: {}]   ;;  %s4819_s8 = inlined_call_operand.vmem [shape: f32[1,128], index: 8, kind: input, shape index: {}]   ;;  %s4820_s9 = inlined_call_operand.hbm [shape: f32[128,128], index: 9, kind: input, shape index: {}]   ;;  %s4821_s10 = inlined_call_operand.vmem [shape: f32[1,128], index: 10, kind: input, shape index: {}]   ;;  %s4822_s11 = inlined_call_operand.hbm [shape: f32[2,16,128], index: 11, kind: output, shape index: {0}]   ;;  %s4823_s12 = inlined_call_operand.hbm [shape: f32[2,4,16,16], index: 12, kind: output, shape index: {1}]  }
   0x1   :  { %4832 = sst [smem:[#allocation21_spill]] %s4819_s8 }
   0x2   :  { %4833 = sst [smem:[#allocation22_spill]] %s4821_s10 }
   0x3   :  { %4834 = sst [smem:[#allocation23_spill]] %s4822_s11 }
   0x4   :  { %4835 = sst [smem:[#allocation24_spill]] %s4823_s12 }
   0x5   :  { %18 = vsyncpa [#allocation3], 0 }
   0x6   :  { %20 = vsyncpa [#allocation3 + $0x1], 0 }
   0x7   :  { %21 = vsyncpa [#allocation6], 0 }
   0x8   :  { %22 = vsyncpa [#allocation9], 0 }
   0x9   :  { %23 = vsyncpa [#allocation4], 0 }
   0xa   :  { %25 = vsyncpa [#allocation4 + $0x1], 0 }
   0xb   :  { %26 = vsyncpa [#allocation13], 0 }
   0xc   :  { %28 = vsyncpa [#allocation13 + $0x1], 0  ;;  %s4068_s21 = smov 0   ;;  %s4070_s22 = smov 0  }
   0xd   :  { %s4072_s23 = smov 0   ;;  %s4074_s24 = smov 0  }
   0xe LB: > { %4836 = sst [smem:[#allocation19_spill]] %s3975_s21  ;;  %s4089_s25 = sadd.s32 4294967295, %s3987_s24   ;;  %s3987_s24 = sphi %s4074_s24, %s4867_s24   ;;  %s3983_s23 = sphi %s4072_s23, %s4866_s23   ;;  %s3979_s22 = sphi %s4070_s22, %s4865_s22   ;;  %s3975_s21 = sphi %s4068_s21, %s4864_s21  }
   0xf   : > { %s2522_s26 = sadd.s32 4294967294, %s3987_s24   ;;  %p54_p0 = scmp.ne.s32.totalorder %s3979_s22, %s3975_s21 }
  0x10   : > { %p4826_p1 = scmp.eq.s32.totalorder %s4089_s25, 0  ;;  %p294_p3 = scmp.eq.s32.totalorder %s2522_s26, 1 }
  0x11   : > { %p2523_p5 = scmp.ge.s32.totalorder %s3987_s24, 1  ;;  %p327_p7 = scmp.lt.s32.totalorder %s3987_s24, 3 }
  0x12   : > { %p4098_p4 = por %p4826_p1, %p54_p0  ;;  %p4103_p6 = por %p294_p3, %p54_p0 }
  0x13   : > { %p4108_p8 = pnand %p2523_p5, %p327_p7  ;;  %s3989_s30 = smov [#allocation5]  }
  0x14   : > { %s4837_s27 = scalar_select %p4098_p4, 1, 0 }
  0x15   : > { %s4838_s28 = scalar_select %p4103_p6, 1, 0 }
  0x16   : > { %s4840_s29 = scalar_select %p4108_p8, 1, 0 }
  0x17   : > { %4839 = sst [smem:[#allocation20_spill]] %s4838_s28  ;;  %s345_s13 = sshll.u32 %s3989_s30, 4  ;;  %s4112_s13 = int_to_ptr.vmem [resolvable:$true] %s345_s13 }
  0x18   : > { %p3474_p9 = pneg %p4108_p8  ;;  %s3990_s15 = smov [#allocation8]  }
  0x19   : > { %s377_s16 = sshll.u32 %s3990_s15, 4  ;;  %s3991_s17 = smov [#allocation7]   ;;  %s4123_s16 = int_to_ptr.vmem [resolvable:$true] %s377_s16 }
  0x1a   : > { %p4119_p11 = pnand %p3474_p9, %p4826_p1  ;;  %s4125_s18 = sshll.u32 %s3991_s17, 4  ;;  %s362_s18 = int_to_ptr.vmem [resolvable:$true] %s4125_s18 }
  0x1b   : > { %s3739_s26 = scalar_lea.hbm %s4814_s3, 2048 }
  0x1c   : > { %p3740_p12 = scmp.ne.s32.totalorder %s4814_s3, %s3739_s26  ;;  %p4135_p13 = pneg %p4119_p11 }
  0x1d   : > { %p3746_p5 = scmp.lt.u32.totalorder %s3739_s26, %s4814_s3 }
  0x1e   : > { %p3742_p0 = pnand %p4135_p13, %p3740_p12 }
  0x20   : > { %p3743_p3 = pneg %p3742_p0 }
  0x22   : > { %p3748_p7 = pnand %p3746_p5, %p3743_p3 }
  0x24   : > { %3751 = shalt.err (!%p3748_p7)
}
  0x25   : > { %s3752_s28 = scalar_lea.vmem %s4112_s13, 2048  ;;  %p3760_p2 = scmp.lt.s32.totalorder %s4112_s13, %s4112_s13 }
  0x26   : > { %p3753_p9 = scmp.ne.s32.totalorder %s4112_s13, %s3752_s28  ;;  %p3761_p6 = scmp.lt.s32.totalorder %s3752_s28, %s3752_s28 }
  0x28   : > { %p3755_p10 = pnand %p3753_p9, %p4135_p13  ;;  %p3762_p12 = por %p3761_p6, %p3760_p2 }
  0x2a   : > { %p3756_p1 = pneg %p3755_p10 }
  0x2c   : > { %p3763_p0 = pnand %p3762_p12, %p3756_p1 }
  0x2e   : > { %3766 = shalt.err (!%p3763_p0)
}
  0x2f   : > { %s3992_s19 = smov 128   ;;  %s3993_s20 = smov 8  }
  0x30   : > { %3477 = dma.hbm_to_vmem [thread:$0]  (!%p4119_p11), %s4814_s3, 2048, %s4112_s13, [#allocation6], %s3992_s19, %s3992_s19, %s3993_s20  }
  0x31   : > { %s3767_s28 = scalar_lea.hbm %s4818_s7, 2048 }
  0x32   : > { %p3768_p1 = scmp.ne.s32.totalorder %s4818_s7, %s3767_s28  ;;  %p3774_p10 = scmp.lt.u32.totalorder %s3767_s28, %s4818_s7 }
  0x34   : > { %p3770_p2 = pnand %p3768_p1, %p4135_p13 }
  0x36   : > { %p3771_p6 = pneg %p3770_p2 }
  0x38   : > { %p3776_p3 = pnand %p3774_p10, %p3771_p6 }
  0x3a   : > { %3779 = shalt.err (!%p3776_p3)
}
  0x3b   : > { %s3780_s13 = scalar_lea.vmem %s4123_s16, 2048  ;;  %p3788_p12 = scmp.lt.s32.totalorder %s4123_s16, %s4123_s16 }
  0x3c   : > { %p3781_p5 = scmp.ne.s32.totalorder %s4123_s16, %s3780_s13  ;;  %p3789_p0 = scmp.lt.s32.totalorder %s3780_s13, %s3780_s13 }
  0x3e   : > { %p3783_p7 = pnand %p3781_p5, %p4135_p13  ;;  %p3790_p1 = por %p3789_p0, %p3788_p12 }
  0x40   : > { %p3784_p9 = pneg %p3783_p7 }
  0x42   : > { %p3791_p2 = pnand %p3790_p1, %p3784_p9 }
  0x44   : > { %3794 = shalt.err (!%p3791_p2)
}
  0x45   : > { %3483 = dma.hbm_to_vmem [thread:$0]  (!%p4119_p11), %s4818_s7, 2048, %s4123_s16, [#allocation9], %s3992_s19, %s3992_s19, %s3993_s20  }
  0x46   : > { %s3795_s26 = scalar_lea.hbm %s4816_s5, 2048 }
  0x47   : > { %p3796_p6 = scmp.ne.s32.totalorder %s4816_s5, %s3795_s26  ;;  %p3802_p5 = scmp.lt.u32.totalorder %s3795_s26, %s4816_s5 }
  0x49   : > { %p3798_p10 = pnand %p3796_p6, %p4135_p13 }
  0x4b   : > { %p3799_p3 = pneg %p3798_p10 }
  0x4d   : > { %p3804_p7 = pnand %p3802_p5, %p3799_p3 }
  0x4f   : > { %3807 = shalt.err (!%p3804_p7)
}
  0x50   : > { %s3808_s13 = scalar_lea.vmem %s362_s18, 2048  ;;  %p3816_p1 = scmp.lt.s32.totalorder %s362_s18, %s362_s18 }
  0x51   : > { %p3809_p9 = scmp.ne.s32.totalorder %s362_s18, %s3808_s13  ;;  %p3817_p2 = scmp.lt.s32.totalorder %s3808_s13, %s3808_s13 }
  0x53   : > { %p3811_p12 = pnand %p3809_p9, %p4135_p13  ;;  %p3818_p4 = por %p3817_p2, %p3816_p1 }
  0x55   : > { %p3812_p0 = pneg %p3811_p12 }
  0x57   : > { %p3819_p8 = pnand %p3818_p4, %p3812_p0 }
  0x59   : > { %3822 = shalt.err (!%p3819_p8)
}
  0x5a   : > { %3480 = dma.hbm_to_vmem [thread:$0]  (!%p4119_p11), %s4816_s5, 2048, %s362_s18, [#allocation6], %s3992_s19, %s3992_s19, %s3993_s20  }
  0x5b   : > { %s3994_s10 = smov [#allocation10]   ;;  %s3823_s30 = scalar_lea.hbm %s4820_s9, 2048 }
  0x5c   : > { %s393_s11 = sshll.u32 %s3994_s10, 4  ;;  %p3824_p4 = scmp.ne.s32.totalorder %s4820_s9, %s3823_s30  ;;  %s394_s11 = int_to_ptr.vmem [resolvable:$true] %s393_s11 }
  0x5d   : > { %p3830_p10 = scmp.lt.u32.totalorder %s3823_s30, %s4820_s9 }
  0x5e   : > { %p3826_p8 = pnand %p3824_p4, %p4135_p13 }
  0x60   : > { %p3827_p6 = pneg %p3826_p8 }
  0x62   : > { %p3832_p3 = pnand %p3830_p10, %p3827_p6 }
  0x64   : > { %3835 = shalt.err (!%p3832_p3)
}
  0x65   : > { %s3836_s18 = scalar_lea.vmem %s394_s11, 2048  ;;  %p3844_p12 = scmp.lt.s32.totalorder %s394_s11, %s394_s11 }
  0x66   : > { %p3837_p5 = scmp.ne.s32.totalorder %s394_s11, %s3836_s18  ;;  %p3845_p0 = scmp.lt.s32.totalorder %s3836_s18, %s3836_s18 }
  0x68   : > { %p3839_p7 = pnand %p3837_p5, %p4135_p13  ;;  %p3846_p1 = por %p3845_p0, %p3844_p12 }
  0x6a   : > { %p3840_p9 = pneg %p3839_p7 }
  0x6c   : > { %p3847_p2 = pnand %p3846_p1, %p3840_p9 }
  0x6e   : > { %3850 = shalt.err (!%p3847_p2)
}
  0x6f   : > { %3486 = dma.hbm_to_vmem [thread:$0]  (!%p4119_p11), %s4820_s9, 2048, %s394_s11, [#allocation9], %s3992_s19, %s3992_s19, %s3993_s20  }
  0x70   : > { %s4229_s21 = sadd.s32 1, %s3987_s24   ;;  %s41_s14 = sadd.s32 1, %s3983_s23 }
  0x71   : > { %s38_s10 = ssub.s32 %s3987_s24, %s4229_s21  ;;  %p48_p13 = scmp.ne.s32.totalorder %s3983_s23, %s3979_s22 }
  0x72   : > { %p39_p4 = scmp.eq.s32.totalorder %s38_s10, 0  ;;  %p49_p8 = scmp.eq.s32.totalorder %s3987_s24, 0 }
  0x73   : > { %p4843_p6 = scmp.eq.s32.totalorder %s4089_s25, 1  ;;  %p3502_p3 = scmp.lt.s32.totalorder %s3987_s24, 2 }
  0x74   : > { %s4245_s26 = scalar_select %p39_p4, %s3983_s23, %s41_s14  }
  0x75   : > { %p4239_p10 = por %p4843_p6, %p48_p13  ;;  %p50_p5 = por %p49_p8, %p48_p13 }
  0x76   : > { %s410_s30 = sand.u32 1, %s3983_s23   ;;  %s2656_s11 = sshll.u32 %s3987_s24, 8 }
  0x77   : > { %s2529_s15 = sshll.u32 %s410_s30, 4  ;;  %s4252_s13 = scalar_lea.hbm %s4811_s0, %s2656_s11 }
  0x78   : > { %s414_s18 = scalar_lea.vmem [#allocation2], %s2529_s15  ;;  %p4256_p11 = pnand %p3502_p3, %p50_p5 }
  0x79   : > { %s421_s16 = sshll.u32 %s414_s18, 4  ;;  %s4260_s14 = scalar_lea.sflag [#allocation3], %s410_s30  ;;  %s4254_s16 = int_to_ptr.vmem [resolvable:$true] %s421_s16 }
  0x7a   : > { %s3851_s10 = scalar_lea.hbm %s4252_s13, 256  ;;  %p3853_p9 = pneg %p4256_p11 }
  0x7b   : > { %p3852_p7 = scmp.ne.s32.totalorder %s4252_s13, %s3851_s10  ;;  %s3856_s17 = scalar_lea.hbm %s4811_s0, 512 }
  0x7c   : > { %p3857_p1 = scmp.lt.u32.totalorder %s4252_s13, %s4811_s0  ;;  %p3858_p2 = scmp.lt.u32.totalorder %s3856_s17, %s3851_s10 }
  0x7d   : > { %p3854_p12 = pnand %p3853_p9, %p3852_p7  ;;  %p3860_p4 = scmp.lt.u32.totalorder %s3851_s10, %s4252_s13 }
  0x7e   : > { %p3859_p13 = por %p3858_p2, %p3857_p1 }
  0x7f   : > { %p3855_p0 = pneg %p3854_p12 }
  0x80   : > { %p3861_p8 = por %p3860_p4, %p3859_p13 }
  0x82   : > { %p3862_p6 = pnand %p3861_p8, %p3855_p0 }
  0x84   : > { %3865 = shalt.err (!%p3862_p6)
}
  0x85   : > { %s3866_s30 = scalar_lea.vmem %s4254_s16, 256  ;;  %s3995_s15 = smov [#allocation2]  }
  0x86   : > { %p3867_p3 = scmp.ne.s32.totalorder %s4254_s16, %s3866_s30  ;;  %s3871_s11 = sshll.u32 %s3995_s15, 4  ;;  %s3872_s11 = int_to_ptr.vmem [resolvable:$false] %s3871_s11 }
  0x87   : > { %s3873_s28 = scalar_lea.vmem %s3872_s11, 512  ;;  %p3874_p12 = scmp.lt.s32.totalorder %s4254_s16, %s3872_s11 }
  0x88   : > { %p3869_p5 = pnand %p3867_p3, %p3853_p9  ;;  %p3875_p1 = scmp.lt.s32.totalorder %s3873_s28, %s3866_s30 }
  0x8a   : > { %p3870_p7 = pneg %p3869_p5  ;;  %p3876_p2 = por %p3875_p1, %p3874_p12 }
  0x8c   : > { %p3877_p13 = pnand %p3876_p2, %p3870_p7 }
  0x8e   : > { %3880 = shalt.err (!%p3877_p13)
}
  0x8f   : > { %3490 = dma.hbm_to_vmem [thread:$0]  (!%p4256_p11), %s4252_s13, 256, %s4254_s16, %s4260_s14, %s3992_s19, %s3992_s19, %s3993_s20  }
  0x90   : > { %p4846_p9 = scmp.ne.s32.totalorder %s4840_s29, 0 }
  0x91   : > { %s4294_s10 = sand.u32 (!%p4846_p9), 1, %s3979_s22   ;;  %p4847_p0 = scmp.ne.s32.totalorder (!%p4846_p9), %s4837_s27, 0 }
  0x92   : > { %433 = sbr.rel (%p4846_p9) target bundleno = 3362 (0xd22), region = 64  ;;  %s2533_s17 = sshll.u32 (!%p4846_p9), %s4294_s10, 4 }
  0x93   : > { %s436_s18 = scalar_lea.sflag (!%p4846_p9), [#allocation3], %s4294_s10  ;;  %s4300_s8 = scalar_lea.vmem (!%p4846_p9), [#allocation2], %s2533_s17 }
  0x99   : > { %3954 = dma.done.wait (%p4847_p0), %s436_s18, 256  }
  0x9a   : > { %3956 = vsyncadd (%p4847_p0), %s436_s18, 4294967040  ;;  %p4848_p11 = scmp.eq.s32.totalorder %s4089_s25, 0 }
  0x9c   : > { %3958 = dma.done.wait (%p4848_p11), [#allocation6], 4096   ;;  %p4849_p4 = pmov %p4848_p11 }
  0x9e   : > { %3960 = vsyncadd (%p4849_p4), [#allocation6], 4294963200  ;;  %p4850_p8 = pmov %p4849_p4 }
  0x9f   : > { %p4851_p6 = pmov %p4849_p4 }
  0xa0   : > { %3962 = dma.done.wait (%p4850_p8), [#allocation9], 4096  }
  0xa1   : > { %3964 = vsyncadd (%p4851_p6), [#allocation9], 4294963200  ;;  %v501_v0 = vld [vmem:[%s4300_s8] sm:$0xff]  ;;  %v502_v1 = vld [vmem:[%s4300_s8 + $0x8] sm:$0xff]  ;;  %vm838_vm0 = vcmask 261120   ;;  %s4854_s28 = sld [smem:[#allocation21_spill]] }
  0xa2   : > { %505 = vadd.xlane.f32.xlu0 %v501_v0  ;;  %v544_v2 = vld [vmem:[#allocation5] sm:$0xff]  ;;  %v545_v3 = vld [vmem:[#allocation5 + $0x8] sm:$0xff]  ;;  %v546_v4 = vld [vmem:[#allocation5 + $0x10] sm:$0xff]  ;;  %vm928_vm2 = vcmask 130048   ;;  %s3996_s18 = smov 96   ;;  %s2539_s27 = sshll.u32 %s4294_s10, 6 }
  0xa3   : > { %v3118_v5 = vpack.c.bf16 %v545_v3, %v544_v2  ;;  %v547_v6 = vld [vmem:[#allocation5 + $0x18] sm:$0xff]  ;;  %v548_v8 = vld [vmem:[#allocation5 + $0x20] sm:$0xff]  ;;  %v549_v9 = vld [vmem:[#allocation5 + $0x28] sm:$0xff]  ;;  %s4371_s29 = scalar_lea.vmem [#allocation12], %s2539_s27  ;;  %s3997_s19 = smov 64  }
  0xa4   : > { %v3122_v7 = vpack.c.bf16 %v547_v6, %v546_v4  ;;  %v3126_v10 = vpack.c.bf16 %v549_v9, %v548_v8  ;;  %v550_v11 = vld [vmem:[#allocation5 + $0x30] sm:$0xff]  ;;  %v551_v12 = vld [vmem:[#allocation5 + $0x38] sm:$0xff]  ;;  %v552_v14 = vld [vmem:[#allocation5 + $0x40] sm:$0xff]  ;;  %s3998_s20 = smov 32   ;;  %s2658_s13 = sshll.u32 %s4089_s25, 10 }
  0xa5   : > { %3119 = vmatprep.subr.bf16.mxu0 %v3118_v5  ;;  %v3130_v13 = vpack.c.bf16 %v551_v12, %v550_v11  ;;  %v553_v15 = vld [vmem:[#allocation5 + $0x48] sm:$0xff]  ;;  %v554_v25 = vld [vmem:[#allocation5 + $0x50] sm:$0xff]  ;;  %v555_v26 = vld [vmem:[#allocation5 + $0x58] sm:$0xff]  ;;  %s2379_s16 = sshll.u32 %s4371_s29, 4  ;;  %s4855_s15 = sld [smem:[#allocation24_spill]]  ;;  %s4722_s16 = int_to_ptr.vmem [resolvable:$true] %s2379_s16 }
  0xa6   : > { %507 = vadd.xlane.f32.xlu0 %v502_v1  ;;  %3121 = vmatpush3.bf16.xpose.msra.mxu0 %v3118_v5  ;;  %v3134_v16 = vpack.c.bf16 %v553_v15, %v552_v14  ;;  %v3138_v27 = vpack.c.bf16 %v555_v26, %v554_v25  ;;  %v556_v28 = vld [vmem:[#allocation5 + $0x60] sm:$0xff]  ;;  %v557_v29 = vld [vmem:[#allocation5 + $0x68] sm:$0xff]  ;;  %v558_v31 = vld [vmem:[#allocation5 + $0x70] sm:$0xff]  ;;  %s3999_s27 = smov [#allocation12]  }
  0xa7   : > { %3123 = vmatprep.subr.bf16.mxu0 %v3122_v7  ;;  %v3142_v30 = vpack.c.bf16 %v557_v29, %v556_v28  ;;  %v559_v32 = vld [vmem:[#allocation5 + $0x78] sm:$0xff]  ;;  %v642_v34 = vld [vmem:[#allocation7] sm:$0xff]  ;;  %v643_v35 = vld [vmem:[#allocation7 + $0x8] sm:$0xff] }
  0xa8   : > { %v3146_v33 = vpack.c.bf16 %v559_v32, %v558_v31  ;;  %v3150_v36 = vpack.c.bf16 %v643_v35, %v642_v34  ;;  %v2540_v44 = vld [vmem:[%s4812_s1] ss:$0 sm:$0xff]  ;;  %v644_v51 = vld [vmem:[#allocation7 + $0x10] sm:$0xff]  ;;  %v645_v52 = vld [vmem:[#allocation7 + $0x18] sm:$0xff] }
  0xa9   : > { %v2541_v46 = vld [vmem:[%s4813_s2] ss:$0 sm:$0xff]  ;;  %v3154_v55 = vpack.c.bf16 %v645_v52, %v644_v51  ;;  %v647_v57 = vld [vmem:[#allocation7 + $0x28] sm:$0xff]  ;;  %v648_v59 = vld [vmem:[#allocation7 + $0x30] sm:$0xff] }
  0xaa   : > { %v646_v56 = vld [vmem:[#allocation7 + $0x20] sm:$0xff]  ;;  %v649_v60 = vld [vmem:[#allocation7 + $0x38] sm:$0xff]  ;;  %v651_v63 = vld [vmem:[#allocation7 + $0x48] sm:$0xff] }
  0xab   : > { %v3158_v58 = vpack.c.bf16 %v647_v57, %v646_v56  ;;  %v3162_v61 = vpack.c.bf16 %v649_v60, %v648_v59  ;;  %v650_v62 = vld [vmem:[#allocation7 + $0x40] sm:$0xff]  ;;  %v653_v2 = vld [vmem:[#allocation7 + $0x58] sm:$0xff]  ;;  %v655_v5 = vld [vmem:[#allocation7 + $0x68] sm:$0xff]  ;;  %s4720_s11 = scalar_lea.hbm %s4855_s15, %s2658_s13 }
  0xac   : > { %v654_v4 = vld [vmem:[#allocation7 + $0x60] sm:$0xff]  ;;  %v657_v8 = vld [vmem:[#allocation7 + $0x78] sm:$0xff]  ;;  %v741_v11 = vld [vmem:[#allocation8 + $0x8] sm:$0xff] }
  0xad   : > { %v3174_v6 = vpack.c.bf16 %v655_v5, %v654_v4  ;;  %v743_v14 = vld [vmem:[#allocation8 + $0x18] sm:$0xff]  ;;  %v750_v25 = vld [vmem:[#allocation8 + $0x50] sm:$0xff]  ;;  %v752_v28 = vld [vmem:[#allocation8 + $0x60] sm:$0xff] }
  0xae   : > { %3125 = vmatpush3.bf16.xpose.msra.mxu0 %v3122_v7  ;;  %v656_v7 = vld [vmem:[#allocation7 + $0x70] sm:$0xff]  ;;  %v751_v26 = vld [vmem:[#allocation8 + $0x58] sm:$0xff]  ;;  %v753_v29 = vld [vmem:[#allocation8 + $0x68] sm:$0xff] }
  0xaf   : > { %3127 = vmatprep.subr.bf16.mxu0 %v3126_v10  ;;  %v3178_v9 = vpack.c.bf16 %v657_v8, %v656_v7  ;;  %v754_v31 = vld [vmem:[#allocation8 + $0x70] sm:$0xff]  ;;  %v755_v32 = vld [vmem:[#allocation8 + $0x78] sm:$0xff]  ;;  %v2542_v34 = vld [vmem:[%s4815_s4] ss:$0 sm:$0xff] }
  0xb0   : > { %vm4341_vm1 = vmpackc.low %vm838_vm0, %vm838_vm0 }
  0xb6   : > { %3129 = vmatpush3.bf16.xpose.msra.mxu0 %v3126_v10  ;;  %v740_v10 = vld [vmem:[#allocation8] sm:$0xff] }
  0xb7   : > { %3131 = vmatprep.subr.bf16.mxu0 %v3130_v13  ;;  %v3182_v12 = vpack.c.bf16 %v741_v11, %v740_v10 }
  0xbe   : > { %3133 = vmatpush3.bf16.xpose.msra.mxu0 %v3130_v13  ;;  %v742_v13 = vld [vmem:[#allocation8 + $0x10] sm:$0xff] }
  0xbf   : > { %3135 = vmatprep.subr.bf16.mxu0 %v3134_v16  ;;  %v3186_v15 = vpack.c.bf16 %v743_v14, %v742_v13 }
  0xc6   : > { %3137 = vmatpush3.bf16.xpose.msra.mxu0 %v3134_v16  ;;  %v744_v16 = vld [vmem:[#allocation8 + $0x20] sm:$0xff] }
  0xc7   : > { %3139 = vmatprep.subr.bf16.mxu0 %v3138_v27 }
  0xce   : > { %3141 = vmatpush3.bf16.xpose.msra.mxu0 %v3138_v27  ;;  %v3202_v27 = vpack.c.bf16 %v751_v26, %v750_v25 }
  0xcf   : > { %3143 = vmatprep.subr.bf16.mxu0 %v3142_v30 }
  0xd6   : > { %3145 = vmatpush3.bf16.xpose.msra.mxu0 %v3142_v30  ;;  %v3206_v30 = vpack.c.bf16 %v753_v29, %v752_v28 }
  0xd7   : > { %3147 = vmatprep.subr.bf16.mxu0 %v3146_v33 }
  0xde   : > { %3149 = vmatpush3.bf16.xpose.msra.mxu0 %v3146_v33  ;;  %v3210_v33 = vpack.c.bf16 %v755_v32, %v754_v31 }
  0xdf   : > { %3151 = vmatprep.subr.bf16.mxu0 %v3150_v36 }
 0x12f   : > { %v506_v17 = vpop.xlane.xlu0 %505 }
 0x130   : > { %v510_v18 = vmul.f32 0.0078125, %v506_v17  ;;  %v745_v17 = vld [vmem:[#allocation8 + $0x28] sm:$0xff] }
 0x132   : > { %v512_v19 = vsub.f32 %v501_v0, %v510_v18  ;;  %v3166_v0 = vpack.c.bf16 %v651_v63, %v650_v62  ;;  %v3190_v18 = vpack.c.bf16 %v745_v17, %v744_v16 }
 0x133   : > { %v508_v20 = vpop.xlane.xlu0 %507 }
 0x134   : > { %v511_v21 = vmul.f32 0.0078125, %v508_v20  ;;  %v514_v22 = vmul.f32 %v512_v19, %v512_v19  ;;  %v747_v20 = vld [vmem:[#allocation8 + $0x38] sm:$0xff] }
 0x136   : > { %v513_v23 = vsub.f32 %v502_v1, %v511_v21  ;;  %516 = vadd.xlane.f32.xlu1 %v514_v22  ;;  %v652_v1 = vld [vmem:[#allocation7 + $0x50] sm:$0xff]  ;;  %v748_v22 = vld [vmem:[#allocation8 + $0x40] sm:$0xff] }
 0x137   : > { %v3170_v3 = vpack.c.bf16 %v653_v2, %v652_v1 }
 0x138   : > { %v515_v24 = vmul.f32 %v513_v23, %v513_v23 }
 0x13a   : > { %518 = vadd.xlane.f32.xlu1 %v515_v24 }
 0x1c3   : > { %v517_v37 = vpop.xlane.xlu1 %516 }
 0x1c4   : > { %v520_v38 = vmul.f32 0.0078125, %v517_v37 }
 0x1c6   : > { %v522_v39 = vadd.f32 1e-05, %v520_v38 }
 0x1c7   : > { %v519_v40 = vpop.xlane.xlu1 %518 }
 0x1c8   : > { %3701 = vrsqrt.f32 %v522_v39  ;;  %v521_v41 = vmul.f32 0.0078125, %v519_v40  ;;  %v2543_v39 = vld [vmem:[%s4817_s6] ss:$0 sm:$0xff] }
 0x1ca   : > { %v523_v42 = vadd.f32 1e-05, %v521_v41 }
 0x1cc   : > { %3703 = vrsqrt.f32 %v523_v42 }
 0x1d2   : > { %v3702_v43 = vpop.eup %3701 }
 0x1d3   : > { %v526_v45 = vmul.f32 %v3702_v43, %v512_v19  ;;  %v746_v19 = vld [vmem:[#allocation8 + $0x30] sm:$0xff] }
 0x1d4   : > { %v3194_v21 = vpack.c.bf16 %v747_v20, %v746_v19 }
 0x1d5   : > { %v534_v47 = vmul.f32 %v2540_v44, %v526_v45 }
 0x1d6   : > { %v3704_v48 = vpop.eup %3703 }
 0x1d7   : > { %v542_v49 = vadd.f32 %v2541_v46, %v534_v47  ;;  %v527_v50 = vmul.f32 %v3704_v48, %v513_v23  ;;  %v749_v23 = vld [vmem:[#allocation8 + $0x48] sm:$0xff]  ;;  %v2544_v47 = vld [vmem:[%s4854_s28] ss:$0 sm:$0xff]  ;;  %s2350_s28 = scalar_lea.sflag [#allocation13], %s4294_s10 }
 0x1d8   : > { %v3198_v24 = vpack.c.bf16 %v749_v23, %v748_v22 }
 0x1d9   : > { %2849 = vmatprep.mubr.f32.mxu0 %v542_v49  ;;  %v535_v53 = vmul.f32 %v2540_v44, %v527_v50 }
 0x1db   : > { %v4322_v54 = vadd.f32 %v2541_v46, %v535_v53 }
 0x1dd   : > { %2850 = vmatmul.mubr.f32.vlgmr.msra.gmra.mrb[0].mxu0 %v4322_v54 }
 0x1de   : > { %3153 = vmatpush3.bf16.xpose.msra.mxu0 %v3150_v36  ;;  %2884 = vmatprep.mubr.f32.mxu0 %v542_v49 }
 0x1df   : > { %3155 = vmatprep.subr.bf16.mxu0 %v3154_v55 }
 0x1e6   : > { %3157 = vmatpush3.bf16.xpose.msra.mxu0 %v3154_v55 }
 0x1e7   : > { %3159 = vmatprep.subr.bf16.mxu0 %v3158_v58 }
 0x1ee   : > { %3161 = vmatpush3.bf16.xpose.msra.mxu0 %v3158_v58 }
 0x1ef   : > { %3163 = vmatprep.subr.bf16.mxu0 %v3162_v61 }
 0x1f6   : > { %3165 = vmatpush3.bf16.xpose.msra.mxu0 %v3162_v61 }
 0x1f7   : > { %3167 = vmatprep.subr.bf16.mxu0 %v3166_v0 }
 0x1fe   : > { %3169 = vmatpush3.bf16.xpose.msra.mxu0 %v3166_v0 }
 0x1ff   : > { %3171 = vmatprep.subr.bf16.mxu0 %v3170_v3 }
 0x206   : > { %3173 = vmatpush3.bf16.xpose.msra.mxu0 %v3170_v3 }
 0x207   : > { %3175 = vmatprep.subr.bf16.mxu0 %v3174_v6 }
 0x20e   : > { %3177 = vmatpush3.bf16.xpose.msra.mxu0 %v3174_v6 }
 0x20f   : > { %3179 = vmatprep.subr.bf16.mxu0 %v3178_v9 }
 0x216   : > { %3181 = vmatpush3.bf16.xpose.msra.mxu0 %v3178_v9 }
 0x217   : > { %3183 = vmatprep.subr.bf16.mxu0 %v3182_v12 }
 0x21d   : > { %2885 = vmatmul.mubr.f32.vlgmr.msra.gmra.mrb[2].mxu0 %v4322_v54 }
 0x21e   : > { %3185 = vmatpush3.bf16.xpose.msra.mxu0 %v3182_v12  ;;  %2919 = vmatprep.mubr.f32.mxu0 %v542_v49 }
 0x21f   : > { %3187 = vmatprep.subr.bf16.mxu0 %v3186_v15 }
 0x226   : > { %3189 = vmatpush3.bf16.xpose.msra.mxu0 %v3186_v15 }
 0x227   : > { %3191 = vmatprep.subr.bf16.mxu0 %v3190_v18 }
 0x22e   : > { %3193 = vmatpush3.bf16.xpose.msra.mxu0 %v3190_v18 }
 0x22f   : > { %3195 = vmatprep.subr.bf16.mxu0 %v3194_v21 }
 0x236   : > { %3197 = vmatpush3.bf16.xpose.msra.mxu0 %v3194_v21 }
 0x237   : > { %3199 = vmatprep.subr.bf16.mxu0 %v3198_v24 }
 0x23e   : > { %3201 = vmatpush3.bf16.xpose.msra.mxu0 %v3198_v24 }
 0x23f   : > { %3203 = vmatprep.subr.bf16.mxu0 %v3202_v27 }
 0x246   : > { %3205 = vmatpush3.bf16.xpose.msra.mxu0 %v3202_v27 }
 0x247   : > { %3207 = vmatprep.subr.bf16.mxu0 %v3206_v30 }
 0x24e   : > { %3209 = vmatpush3.bf16.xpose.msra.mxu0 %v3206_v30 }
 0x24f   : > { %3211 = vmatprep.subr.bf16.mxu0 %v3210_v33 }
 0x256   : > { %3213 = vmatpush3.bf16.xpose.msra.mxu0 %v3210_v33 }
 0x25d   : > { %2920 = vmatmul.mubr.f32.vlgmr.msra.gmra.mrb[4].mxu0 %v4322_v54 }
 0x2b0   : > { %v2851_v35 = vpop.f32.mrb[0].mxu0 }
 0x2b1   : > { %v4330_v36 = vadd.f32 %v2851_v35, %v2542_v34  ;;  %v633_v37 = vpop.f32.mrb[1].mxu0 }
 0x2b2   : > { %v4332_v38 = vadd.f32 %v2542_v34, %v633_v37 }
 0x2b4   : > { %2926 = vmatprep.mubr.msk.f32.mxu0 %vm838_vm0, %v4332_v38 }
 0x2f0   : > { %v2886_v40 = vpop.f32.mrb[2].mxu0 }
 0x2f1   : > { %v737_v41 = vadd.f32 %v2886_v40, %v2543_v39  ;;  %v731_v42 = vpop.f32.mrb[3].mxu0 }
 0x2f2   : > { %v732_v43 = vadd.f32 %v2543_v39, %v731_v42 }
 0x2f4   : > { %v3214_v45 = vpack.c.bf16 %v737_v41, %v732_v43  ;;  %v4345_v46 = vpack.i.bf16 %v737_v41, %v732_v43 }
 0x2f6   : > { %3216 = vmatprep.subr.msk.bf16.mxu0 %vm4341_vm1, %v3214_v45 }
 0x2f7   : > { %3219 = vmatpush3.bf16.xpose.msk.msra.mxu0 %vm4341_vm1, %v3214_v45 }
 0x2fe   : > { %2927 = vmatmul.mubr.msk.f32.vlgmr.msra.gmra.mrb[6].mxu0 %vm838_vm0, %v4330_v36 }
 0x330   : > { %v2921_v48 = vpop.f32.mrb[4].mxu0 }
 0x331   : > { %v835_v49 = vadd.f32 %v2921_v48, %v2544_v47  ;;  %v829_v50 = vpop.f32.mrb[5].mxu0 }
 0x332   : > { %v830_v51 = vadd.f32 %v2544_v47, %v829_v50 }
 0x334   : > { %v3220_v52 = vpack.c.bf16 %v835_v49, %v830_v51  ;;  %v4356_v53 = vpack.i.bf16 %v835_v49, %v830_v51 }
 0x336   : > { %3221 = vmatprep.subr.bf16.mxu0 %v3220_v52 }
 0x337   : > { %3223 = vmatpush3.bf16.msra.mxu0 %v3220_v52 }
 0x3d1   : > { %v2928_v54 = vpop.f32.mrb[6].mxu0 }
 0x3d2   : > { %v927_v55 = vmul.f32 0.17677669, %v2928_v54  ;;  %v917_v56 = vpop.f32.mrb[7].mxu0 }
 0x3d3   : > { %v926_v57 = vmul.f32 0.17677669, %v917_v56 }
 0x3d4   : > { %v932_v58 = vsel %vm928_vm2, %v927_v55, -inf }
 0x3d5   : > { %933 = vmax.xlane.f32.xlu1 %v932_v58  ;;  %v929_v59 = vsel %vm928_vm2, %v926_v57, -inf }
 0x3d6   : > { %930 = vmax.xlane.f32.xlu0 %v929_v59 }
 0x462   : > { %v934_v60 = vpop.xlane.xlu1 %933 }
 0x463   : > { %v936_v61 = vsub.f32 %v927_v55, %v934_v60  ;;  %v931_v62 = vpop.xlane.xlu0 %930 }
 0x464   : > { %v935_v63 = vsub.f32 %v926_v57, %v931_v62 }
 0x465   : > { %v939_v0 = vmul.f32 1.442695, %v936_v61 }
 0x466   : > { %v937_v1 = vmul.f32 1.442695, %v935_v63 }
 0x467   : > { %3705 = vpow2.f32 %v939_v0 }
 0x468   : > { %3707 = vpow2.f32 %v937_v1 }
 0x471   : > { %v3706_v2 = vpop.eup %3705 }
 0x472   : > { %v3708_v3 = vpop.eup %3707  ;;  %v944_v4 = vsel %vm928_vm2, %v3706_v2, 0.0 }
 0x473   : > { %945 = vadd.xlane.f32.xlu1 %v944_v4  ;;  %v941_v5 = vsel %vm928_vm2, %v3708_v3, 0.0 }
 0x474   : > { %942 = vadd.xlane.f32.xlu0 %v941_v5 }
 0x484   : > { %1050 = vrot.lane.b32.xlu1 %v4332_v38, %s3996_s18 }
 0x488   : > { %1052 = vrot.lane.b32.xlu1 %v4330_v36, %s3996_s18 }
 0x48a   : > { %3552 = vrot.lane.b32.xlu0 %v4345_v46, %s3996_s18 }
 0x500   : > { %v946_v6 = vpop.xlane.xlu1 %945 }
 0x501   : > { %3709 = vrcp.f32 %v946_v6  ;;  %v943_v7 = vpop.xlane.xlu0 %942 }
 0x502   : > { %3711 = vrcp.f32 %v943_v7 }
 0x504   : > { %v1051_v16 = vpop.permute.xlu1 %1050 }
 0x505   : > { %v3553_v8 = vpop.permute.xlu0 %3552 }
 0x506   : > { %v3555_v9 = vunpack.i.h.bf16 %v3553_v8  ;;  %v3554_v10 = vunpack.i.l.bf16 %v3553_v8 }
 0x508   : > { %v3224_v11 = vpack.c.bf16 %v3555_v9, %v3554_v10  ;;  %v1053_v17 = vpop.permute.xlu1 %1052 }
 0x50a   : > { %3226 = vmatprep.subr.msk.bf16.mxu0 %vm4341_vm1, %v3224_v11 }
 0x50b   : > { %v3710_v12 = vpop.eup %3709 }
 0x50c   : > { %v3712_v13 = vpop.eup %3711  ;;  %v950_v14 = vmul.f32 %v3710_v12, %v3706_v2 }
 0x50d   : > { %v949_v15 = vmul.f32 %v3712_v13, %v3708_v3 }
 0x50e   : > { %952 = vst.msk [vmem:[%s4371_s29 + $0x8] sm:$0xff] %vm928_vm2, %v950_v14 }
 0x50f   : > { %951 = vst.msk [vmem:[%s4371_s29] sm:$0xff] %vm928_vm2, %v949_v15  ;;  %2933 = vmatprep.mubr.msk.f32.mxu0 %vm928_vm2, %v949_v15 }
 0x510   : > { %2934 = vmatmul.mubr.msk.f32.vlgmr.msra.gmra.mrb[8].mxu0 %vm928_vm2, %v950_v14 }
 0x511   : > { %3229 = vmatpush3.bf16.xpose.msk.msra.mxu0 %vm4341_vm1, %v3224_v11  ;;  %2940 = vmatprep.mubr.msk.f32.mxu0 %vm838_vm0, %v1051_v16 }
 0x518   : > { %2941 = vmatmul.mubr.msk.f32.vlgmr.msra.gmra.mrb[10].mxu0 %vm838_vm0, %v1053_v17 }
 0x5e3   : > { %v4383_v18 = vpop.f32.mrb[8].mxu0 }
 0x5e4   : > { %v4385_v19 = vpop.f32.mrb[9].mxu0 }
 0x5eb   : > { %v2942_v20 = vpop.f32.mrb[10].mxu0 }
 0x5ec   : > { %v1142_v21 = vmul.f32 0.17677669, %v2942_v20  ;;  %v1132_v22 = vpop.f32.mrb[11].mxu0 }
 0x5ed   : > { %v1141_v23 = vmul.f32 0.17677669, %v1132_v22 }
 0x5ee   : > { %v1146_v24 = vsel %vm928_vm2, %v1142_v21, -inf }
 0x5ef   : > { %1147 = vmax.xlane.f32.xlu0 %v1146_v24  ;;  %v1143_v25 = vsel %vm928_vm2, %v1141_v23, -inf }
 0x5f0   : > { %1144 = vmax.xlane.f32.xlu1 %v1143_v25 }
 0x601   : > { %3557 = vrot.lane.b32.xlu1 %v4356_v53, %s3996_s18 }
 0x605   : > { %1563 = vrot.lane.b32.xlu1 %v4332_v38, %s3997_s19 }
 0x609   : > { %1565 = vrot.lane.b32.xlu1 %v4330_v36, %s3997_s19 }
 0x67c   : > { %v1148_v26 = vpop.xlane.xlu0 %1147 }
 0x67d   : > { %v1150_v27 = vsub.f32 %v1142_v21, %v1148_v26  ;;  %v1145_v28 = vpop.xlane.xlu1 %1144 }
 0x67e   : > { %v1149_v29 = vsub.f32 %v1141_v23, %v1145_v28 }
 0x67f   : > { %v1153_v30 = vmul.f32 1.442695, %v1150_v27 }
 0x680   : > { %v1151_v31 = vmul.f32 1.442695, %v1149_v29 }
 0x681   : > { %3713 = vpow2.f32 %v1153_v30  ;;  %v3558_v32 = vpop.permute.xlu1 %3557 }
 0x682   : > { %v3560_v33 = vunpack.i.h.bf16 %v3558_v32  ;;  %v3559_v34 = vunpack.i.l.bf16 %v3558_v32  ;;  %3715 = vpow2.f32 %v1151_v31 }
 0x684   : > { %v3230_v35 = vpack.c.bf16 %v3560_v33, %v3559_v34  ;;  %v4444_v34 = vld [vmem:[#allocation10 + $0x10] sm:$0xff] }
 0x685   : > { %v1564_v55 = vpop.permute.xlu1 %1563 }
 0x686   : > { %3231 = vmatprep.subr.bf16.mxu0 %v3230_v35 }
 0x687   : > { %3233 = vmatpush3.bf16.msra.mxu0 %v3230_v35  ;;  %v4446_v35 = vld [vmem:[#allocation10 + $0x18] sm:$0xff] }
 0x689   : > { %v1566_v56 = vpop.permute.xlu1 %1565 }
 0x68b   : > { %v3714_v37 = vpop.eup %3713 }
 0x68c   : > { %v1158_v39 = vsel %vm928_vm2, %v3714_v37, 0.0  ;;  %v3716_v40 = vpop.eup %3715 }
 0x68d   : > { %1159 = vadd.xlane.f32.xlu0 %v1158_v39  ;;  %v1155_v41 = vsel %vm928_vm2, %v3716_v40, 0.0  ;;  %v4452_v39 = vpack.i.bf16 %v4446_v35, %v4444_v34 }
 0x691   : > { %1156 = vadd.xlane.f32.xlu0 %v1155_v41  ;;  %v4456_v41 = vld [vmem:[#allocation10 + $0x20] sm:$0xff] }
 0x6a7   : > { %3562 = vrot.lane.b32.xlu0 %v4345_v46, %s3997_s19 }
 0x71a   : > { %v1160_v42 = vpop.xlane.xlu0 %1159 }
 0x71b   : > { %3717 = vrcp.f32 %v1160_v42  ;;  %v4458_v42 = vld [vmem:[#allocation10 + $0x28] sm:$0xff] }
 0x71e   : > { %v1157_v43 = vpop.xlane.xlu0 %1156 }
 0x71f   : > { %3719 = vrcp.f32 %v1157_v43 }
 0x722   : > { %v3563_v45 = vpop.permute.xlu0 %3562 }
 0x723   : > { %v3565_v47 = vunpack.i.h.bf16 %v3563_v45  ;;  %v3564_v48 = vunpack.i.l.bf16 %v3563_v45  ;;  %v4468_v45 = vpack.i.bf16 %v4458_v42, %v4456_v41 }
 0x725   : > { %v3718_v49 = vpop.eup %3717  ;;  %v3330_v50 = vpack.c.bf16 %v3565_v47, %v3564_v48  ;;  %v4470_v47 = vld [vmem:[#allocation10 + $0x30] sm:$0xff]  ;;  %v4472_v48 = vld [vmem:[#allocation10 + $0x38] sm:$0xff] }
 0x726   : > { %v1164_v51 = vmul.f32 %v3718_v49, %v3714_v37  ;;  %v4448_v37 = vld [vmem:[#allocation10] sm:$0xff] }
 0x727   : > { %3332 = vmatprep.subr.msk.bf16.mxu0 %vm4341_vm1, %v3330_v50  ;;  %v4474_v49 = vld [vmem:[#allocation10 + $0x40] sm:$0xff] }
 0x728   : > { %2556 = vst.msk [vmem:[%s4371_s29 + $0x18] sm:$0xff] %vm928_vm2, %v1164_v51 }
 0x729   : > { %v3720_v52 = vpop.eup %3719 }
 0x72a   : > { %v1163_v54 = vmul.f32 %v3720_v52, %v3716_v40  ;;  %v4454_v40 = vld [vmem:[#allocation10 + $0x8] sm:$0xff] }
 0x72b   : > { %v4462_v43 = vpack.i.bf16 %v4454_v40, %v4448_v37 }
 0x72c   : > { %2555 = vst.msk [vmem:[%s4371_s29 + $0x10] sm:$0xff] %vm928_vm2, %v1163_v54  ;;  %2947 = vmatprep.mubr.msk.f32.mxu0 %vm928_vm2, %v1163_v54 }
 0x72d   : > { %2948 = vmatmul.mubr.msk.f32.vlgmr.msra.gmra.mrb[12].mxu0 %vm928_vm2, %v1164_v51  ;;  %v4484_v51 = vpack.i.bf16 %v4472_v48, %v4470_v47 }
 0x72e   : > { %3335 = vmatpush3.bf16.xpose.msk.msra.mxu0 %vm4341_vm1, %v3330_v50  ;;  %3024 = vmatprep.mubr.msk.f32.mxu0 %vm838_vm0, %v1564_v55  ;;  %v4476_v50 = vld [vmem:[#allocation10 + $0x48] sm:$0xff] }
 0x72f   : > { %v4488_v52 = vpack.i.bf16 %v4476_v50, %v4474_v49 }
 0x735   : > { %3025 = vmatmul.mubr.msk.f32.vlgmr.msra.gmra.mrb[14].mxu0 %vm838_vm0, %v1566_v56 }
 0x800   : > { %v4411_v57 = vpop.f32.mrb[12].mxu0 }
 0x801   : > { %v1248_v58 = vpop.f32.mrb[13].mxu0 }
 0x802   : > { %2982 = vmatprep.mubr.msk.f32.mxu1 %vm838_vm0, %v1248_v58 }
 0x808   : > { %v3026_v59 = vpop.f32.mrb[14].mxu0 }
 0x809   : > { %v1655_v60 = vmul.f32 0.17677669, %v3026_v59  ;;  %v1645_v61 = vpop.f32.mrb[15].mxu0 }
 0x80a   : > { %v1654_v62 = vmul.f32 0.17677669, %v1645_v61 }
 0x80b   : > { %v1659_v63 = vsel %vm928_vm2, %v1655_v60, -inf }
 0x80c   : > { %1660 = vmax.xlane.f32.xlu0 %v1659_v63  ;;  %v1656_v0 = vsel %vm928_vm2, %v1654_v62, -inf }
 0x80d   : > { %1657 = vmax.xlane.f32.xlu1 %v1656_v0 }
 0x81e   : > { %3567 = vrot.lane.b32.xlu1 %v4356_v53, %s3997_s19 }
 0x822   : > { %1947 = vrot.lane.b32.xlu1 %v4332_v38, %s3998_s20 }
 0x826   : > { %1949 = vrot.lane.b32.xlu1 %v4330_v36, %s3998_s20 }
 0x899   : > { %v1661_v1 = vpop.xlane.xlu0 %1660 }
 0x89a   : > { %v1663_v2 = vsub.f32 %v1655_v60, %v1661_v1  ;;  %v1658_v3 = vpop.xlane.xlu1 %1657 }
 0x89b   : > { %v1662_v4 = vsub.f32 %v1654_v62, %v1658_v3 }
 0x89c   : > { %v1666_v5 = vmul.f32 1.442695, %v1663_v2 }
 0x89d   : > { %v1664_v6 = vmul.f32 1.442695, %v1662_v4 }
 0x89e   : > { %3721 = vpow2.f32 %v1666_v5  ;;  %v3568_v7 = vpop.permute.xlu1 %3567 }
 0x89f   : > { %v3570_v8 = vunpack.i.h.bf16 %v3568_v7  ;;  %v3569_v9 = vunpack.i.l.bf16 %v3568_v7  ;;  %3723 = vpow2.f32 %v1664_v6 }
 0x8a1   : > { %v3336_v10 = vpack.c.bf16 %v3570_v8, %v3569_v9 }
 0x8a3   : > { %3337 = vmatprep.subr.bf16.mxu0 %v3336_v10 }
 0x8a4   : > { %3339 = vmatpush3.bf16.msra.mxu0 %v3336_v10 }
 0x8a8   : > { %v3722_v11 = vpop.eup %3721 }
 0x8a9   : > { %v1671_v38 = vsel %vm928_vm2, %v3722_v11, 0.0  ;;  %v3724_v12 = vpop.eup %3723 }
 0x8aa   : > { %1672 = vadd.xlane.f32.xlu0 %v1671_v38  ;;  %v1668_v36 = vsel %vm928_vm2, %v3724_v12, 0.0 }
 0x8ae   : > { %1669 = vadd.xlane.f32.xlu0 %v1668_v36 }
 0x8c4   : > { %3572 = vrot.lane.b32.xlu0 %v4345_v46, %s3998_s20  ;;  %v1948_v46 = vpop.permute.xlu1 %1947 }
 0x8c8   : > { %v1950_v25 = vpop.permute.xlu1 %1949 }
 0x937   : > { %v1673_v13 = vpop.xlane.xlu0 %1672 }
 0x938   : > { %3725 = vrcp.f32 %v1673_v13 }
 0x93b   : > { %v1670_v14 = vpop.xlane.xlu0 %1669 }
 0x93c   : > { %3727 = vrcp.f32 %v1670_v14 }
 0x93f   : > { %v3573_v15 = vpop.permute.xlu0 %3572 }
 0x940   : > { %v3575_v16 = vunpack.i.h.bf16 %v3573_v15  ;;  %v3574_v17 = vunpack.i.l.bf16 %v3573_v15 }
 0x942   : > { %v3726_v20 = vpop.eup %3725  ;;  %v3388_v21 = vpack.c.bf16 %v3575_v16, %v3574_v17  ;;  %v4514_v16 = vld [vmem:[#allocation10 + $0x50] sm:$0xff]  ;;  %v4516_v17 = vld [vmem:[#allocation10 + $0x58] sm:$0xff] }
 0x943   : > { %v1677_v22 = vmul.f32 %v3726_v20, %v3722_v11 }
 0x944   : > { %3390 = vmatprep.subr.msk.bf16.mxu0 %vm4341_vm1, %v3388_v21 }
 0x945   : > { %2600 = vst.msk [vmem:[%s4371_s29 + $0x28] sm:$0xff] %vm928_vm2, %v1677_v22 }
 0x946   : > { %v3728_v23 = vpop.eup %3727 }
 0x947   : > { %v1676_v24 = vmul.f32 %v3728_v23, %v3724_v12  ;;  %v4522_v23 = vld [vmem:[#allocation10 + $0x70] sm:$0xff] }
 0x949   : > { %2599 = vst.msk [vmem:[%s4371_s29 + $0x20] sm:$0xff] %vm928_vm2, %v1676_v24  ;;  %3031 = vmatprep.mubr.msk.f32.mxu0 %vm928_vm2, %v1676_v24  ;;  %v4524_v24 = vld [vmem:[#allocation10 + $0x78] sm:$0xff] }
 0x94a   : > { %3032 = vmatmul.mubr.msk.f32.vlgmr.msra.gmra.mrb[16].mxu0 %vm928_vm2, %v1677_v22  ;;  %v3606_v22 = vpack.i.bf16 %v4516_v17, %v4514_v16 }
 0x94b   : > { %3393 = vmatpush3.bf16.xpose.msk.msra.mxu0 %vm4341_vm1, %v3388_v21  ;;  %3073 = vmatprep.mubr.msk.f32.mxu0 %vm838_vm0, %v1948_v46 }
 0x952   : > { %3074 = vmatmul.mubr.msk.f32.vlgmr.msra.gmra.mrb[18].mxu0 %vm838_vm0, %v1950_v25  ;;  %v3616_v25 = vpack.i.bf16 %v4524_v24, %v4522_v23 }
 0xa1d   : > { %v4438_v26 = vpop.f32.mrb[16].mxu0 }
 0xa1e   : > { %v4440_v27 = vpop.f32.mrb[17].mxu0 }
 0xa25   : > { %v3075_v28 = vpop.f32.mrb[18].mxu0 }
 0xa26   : > { %v2039_v29 = vmul.f32 0.17677669, %v3075_v28  ;;  %v2029_v30 = vpop.f32.mrb[19].mxu0  ;;  %v4533_v28 = vld [vmem:[#allocation10 + $0x60] sm:$0xff] }
 0xa27   : > { %v2038_v31 = vmul.f32 0.17677669, %v2029_v30 }
 0xa28   : > { %v2043_v32 = vsel %vm928_vm2, %v2039_v29, -inf }
 0xa29   : > { %2044 = vmax.xlane.f32.xlu0 %v2043_v32  ;;  %v2040_v33 = vsel %vm928_vm2, %v2038_v31, -inf }
 0xa2a   : > { %2041 = vmax.xlane.f32.xlu1 %v2040_v33 }
 0xa3b   : > { %3582 = vrot.lane.b32.xlu1 %v4452_v39, %s3996_s18 }
 0xa3f   : > { %3577 = vrot.lane.b32.xlu0 %v4462_v43, %s3996_s18  ;;  %3587 = vrot.lane.b32.xlu1 %v4468_v45, %s3996_s18 }
 0xa43   : > { %3592 = vrot.lane.b32.xlu0 %v4484_v51, %s3996_s18  ;;  %3597 = vrot.lane.b32.xlu1 %v4488_v52, %s3996_s18 }
 0xab6   : > { %v2045_v54 = vpop.xlane.xlu0 %2044 }
 0xab7   : > { %v2047_v55 = vsub.f32 %v2039_v29, %v2045_v54  ;;  %v2042_v56 = vpop.xlane.xlu1 %2041  ;;  %v4535_v29 = vld [vmem:[#allocation10 + $0x68] sm:$0xff] }
 0xab8   : > { %v2046_v58 = vsub.f32 %v2038_v31, %v2042_v56  ;;  %v3611_v30 = vpack.i.bf16 %v4535_v29, %v4533_v28 }
 0xab9   : > { %v2050_v59 = vmul.f32 1.442695, %v2047_v55 }
 0xaba   : > { %v2048_v60 = vmul.f32 1.442695, %v2046_v58  ;;  %v3578_v61 = vpop.permute.xlu0 %3577 }
 0xabb   : > { %3729 = vpow2.f32 %v2050_v59  ;;  %v3580_v62 = vunpack.i.h.bf16 %v3578_v61  ;;  %v3579_v63 = vunpack.i.l.bf16 %v3578_v61  ;;  %v3583_v0 = vpop.permute.xlu1 %3582 }
 0xabc   : > { %3731 = vpow2.f32 %v2048_v60  ;;  %v3585_v1 = vunpack.i.h.bf16 %v3583_v0  ;;  %v3584_v2 = vunpack.i.l.bf16 %v3583_v0 }
 0xabd   : > { %v3234_v3 = vpack.c.bf16 %v3580_v62, %v3579_v63 }
 0xabe   : > { %v3240_v4 = vpack.c.bf16 %v3585_v1, %v3584_v2  ;;  %v3593_v38 = vpop.permute.xlu0 %3592 }
 0xabf   : > { %3236 = vmatprep.subr.msk.bf16.mxu1 %vm4341_vm1, %v3234_v3  ;;  %v3588_v5 = vpop.permute.xlu1 %3587  ;;  %v3595_v36 = vunpack.i.h.bf16 %v3593_v38  ;;  %v3594_v13 = vunpack.i.l.bf16 %v3593_v38 }
 0xac0   : > { %3239 = vmatpush3.bf16.xpose.msk.msra.mxu1 %vm4341_vm1, %v3234_v3  ;;  %v3590_v6 = vunpack.i.h.bf16 %v3588_v5  ;;  %v3589_v7 = vunpack.i.l.bf16 %v3588_v5  ;;  %v3288_v5 = vpack.c.bf16 %v4446_v35, %v4444_v34  ;;  %v3312_v34 = vpack.c.bf16 %v4516_v17, %v4514_v16 }
 0xac1   : > { %3242 = vmatprep.subr.msk.bf16.mxu1 %vm4341_vm1, %v3240_v4  ;;  %v3252_v14 = vpack.c.bf16 %v3595_v36, %v3594_v13  ;;  %v3318_v35 = vpack.c.bf16 %v4535_v29, %v4533_v28 }
 0xac2   : > { %v3246_v9 = vpack.c.bf16 %v3590_v6, %v3589_v7 }
 0xac3   : > { %v3598_v15 = vpop.permute.xlu1 %3597 }
 0xac4   : > { %v3600_v20 = vunpack.i.h.bf16 %v3598_v15  ;;  %v3599_v21 = vunpack.i.l.bf16 %v3598_v15 }
 0xac5   : > { %v4500_v8 = vpop.eup %3729 }
 0xac6   : > { %v4502_v10 = vpop.eup %3731  ;;  %v2055_v11 = vsel %vm928_vm2, %v4500_v8, 0.0  ;;  %v3258_v46 = vpack.c.bf16 %v3600_v20, %v3599_v21 }
 0xac7   : > { %2056 = vadd.xlane.f32.xlu1 %v2055_v11  ;;  %v2052_v12 = vsel %vm928_vm2, %v4502_v10, 0.0 }
 0xac8   : > { %2053 = vadd.xlane.f32.xlu0 %v2052_v12  ;;  %3245 = vmatpush3.bf16.xpose.msk.msra.mxu1 %vm4341_vm1, %v3240_v4  ;;  %v3282_v4 = vpack.c.bf16 %v4454_v40, %v4448_v37  ;;  %v3294_v37 = vpack.c.bf16 %v4458_v42, %v4456_v41  ;;  %v3324_v40 = vpack.c.bf16 %v4524_v24, %v4522_v23 }
 0xac9   : > { %3248 = vmatprep.subr.msk.bf16.mxu1 %vm4341_vm1, %v3246_v9 }
 0xad0   : > { %3251 = vmatpush3.bf16.xpose.msk.msra.mxu1 %vm4341_vm1, %v3246_v9 }
 0xad1   : > { %3254 = vmatprep.subr.msk.bf16.mxu1 %vm4341_vm1, %v3252_v14 }
 0xad8   : > { %3607 = vrot.lane.b32.xlu1 %v3606_v22, %s3996_s18  ;;  %3257 = vmatpush3.bf16.xpose.msk.msra.mxu1 %vm4341_vm1, %v3252_v14 }
 0xad9   : > { %3260 = vmatprep.subr.msk.bf16.mxu1 %vm4341_vm1, %v3258_v46 }
 0xadc   : > { %3617 = vrot.lane.b32.xlu1 %v3616_v25, %s3996_s18 }
 0xade   : > { %3602 = vrot.lane.b32.xlu0 %v4356_v53, %s3998_s20 }
 0xae0   : > { %3263 = vmatpush3.bf16.xpose.msk.msra.mxu1 %vm4341_vm1, %v3258_v46  ;;  %3627 = vrot.lane.b32.xlu1 %v4452_v39, %s3997_s19 }
 0xae2   : > { %3612 = vrot.lane.b32.xlu0 %v3611_v30, %s3996_s18  ;;  %s3881_s18 = scalar_lea.vmem %s4722_s16, 1024 }
 0xae3   : > { %p3882_p3 = scmp.ne.s32.totalorder %s4722_s16, %s3881_s18 }
 0xae4   : > { %3637 = vrot.lane.b32.xlu1 %v4484_v51, %s3997_s19 }
 0xae5   : > { %p3883_p5 = pnand %p3882_p3, %p4239_p10 }
 0xae6   : > { %3622 = vrot.lane.b32.xlu0 %v4462_v43, %s3997_s19 }
 0xae7   : > { %p3884_p7 = pneg %p3883_p5 }
 0xae8   : > { %3647 = vrot.lane.b32.xlu1 %v3606_v22, %s3997_s19 }
 0xaea   : > { %3632 = vrot.lane.b32.xlu0 %v4468_v45, %s3997_s19 }
 0xaec   : > { %3657 = vrot.lane.b32.xlu1 %v3616_v25, %s3997_s19 }
 0xaee   : > { %3642 = vrot.lane.b32.xlu0 %v4488_v52, %s3997_s19 }
 0xaf0   : > { %3667 = vrot.lane.b32.xlu1 %v4452_v39, %s3998_s20 }
 0xaf2   : > { %3652 = vrot.lane.b32.xlu0 %v3611_v30, %s3997_s19  ;;  %s3885_s19 = sshll.u32 %s3999_s27, 4  ;;  %s3886_s19 = int_to_ptr.vmem [resolvable:$false] %s3885_s19 }
 0xaf3   : > { %p3888_p12 = scmp.lt.s32.totalorder %s4722_s16, %s3886_s19 }
 0xaf4   : > { %3677 = vrot.lane.b32.xlu1 %v4484_v51, %s3998_s20 }
 0xaf6   : > { %3662 = vrot.lane.b32.xlu0 %v4462_v43, %s3998_s20 }
 0xaf8   : > { %3687 = vrot.lane.b32.xlu1 %v3606_v22, %s3998_s20 }
 0xafa   : > { %3672 = vrot.lane.b32.xlu0 %v4468_v45, %s3998_s20 }
 0xafc   : > { %3697 = vrot.lane.b32.xlu1 %v3616_v25, %s3998_s20 }
 0xafe   : > { %3682 = vrot.lane.b32.xlu0 %v4488_v52, %s3998_s20 }
 0xb02   : > { %3692 = vrot.lane.b32.xlu0 %v3611_v30, %s3998_s20 }
 0xb54   : > { %v2057_v53 = vpop.xlane.xlu1 %2056 }
 0xb55   : > { %3733 = vrcp.f32 %v2057_v53  ;;  %v2054_v31 = vpop.xlane.xlu0 %2053 }
 0xb56   : > { %3735 = vrcp.f32 %v2054_v31 }
 0xb58   : > { %v3608_v32 = vpop.permute.xlu1 %3607 }
 0xb59   : > { %v3610_v33 = vunpack.i.h.bf16 %v3608_v32  ;;  %v3609_v39 = vunpack.i.l.bf16 %v3608_v32  ;;  %v3603_v43 = vpop.permute.xlu0 %3602 }
 0xb5a   : > { %v3605_v51 = vunpack.i.h.bf16 %v3603_v43  ;;  %v3604_v54 = vunpack.i.l.bf16 %v3603_v43 }
 0xb5b   : > { %v3264_v55 = vpack.c.bf16 %v3610_v33, %v3609_v39 }
 0xb5c   : > { %v3394_v56 = vpack.c.bf16 %v3605_v51, %v3604_v54  ;;  %v3618_v45 = vpop.permute.xlu1 %3617 }
 0xb5d   : > { %3266 = vmatprep.subr.msk.bf16.mxu1 %vm4341_vm1, %v3264_v55  ;;  %v3613_v52 = vpop.permute.xlu0 %3612  ;;  %v3620_v61 = vunpack.i.h.bf16 %v3618_v45  ;;  %v3619_v62 = vunpack.i.l.bf16 %v3618_v45 }
 0xb5e   : > { %3269 = vmatpush3.bf16.xpose.msk.msra.mxu1 %vm4341_vm1, %v3264_v55  ;;  %3395 = vmatprep.subr.bf16.mxu0 %v3394_v56  ;;  %v3615_v58 = vunpack.i.h.bf16 %v3613_v52  ;;  %v3614_v59 = vunpack.i.l.bf16 %v3613_v52 }
 0xb5f   : > { %v3734_v60 = vpop.eup %3733  ;;  %3397 = vmatpush3.bf16.msra.mxu0 %v3394_v56  ;;  %v3276_v3 = vpack.c.bf16 %v3620_v61, %v3619_v62 }
 0xb60   : > { %v3736_v63 = vpop.eup %3735  ;;  %v2061_v0 = vmul.f32 %v3734_v60, %v4500_v8  ;;  %v3270_v1 = vpack.c.bf16 %v3615_v58, %v3614_v59 }
 0xb61   : > { %v2060_v2 = vmul.f32 %v3736_v63, %v4502_v10  ;;  %v3623_v41 = vpop.permute.xlu0 %3622 }
 0xb62   : > { %2626 = vst.msk [vmem:[%s4371_s29 + $0x38] sm:$0xff] %vm928_vm2, %v2061_v0  ;;  %3272 = vmatprep.subr.msk.bf16.mxu1 %vm4341_vm1, %v3270_v1  ;;  %v3625_v42 = vunpack.i.h.bf16 %v3623_v41 }
 0xb63   : > { %2625 = vst.msk [vmem:[%s4371_s29 + $0x30] sm:$0xff] %vm928_vm2, %v2060_v2  ;;  %3080 = vmatprep.mubr.msk.f32.mxu0 %vm928_vm2, %v2060_v2  ;;  %s3887_s29 = scalar_lea.vmem %s3886_s19, 2048 }
 0xb64   : > { %3081 = vmatmul.mubr.msk.f32.vlgmr.msra.gmra.mrb[20].mxu0 %vm928_vm2, %v2061_v0  ;;  %p3889_p1 = scmp.lt.s32.totalorder %s3887_s29, %s3881_s18 }
 0xb65   : > { %v3633_v8 = vpop.permute.xlu0 %3632 }
 0xb66   : > { %3275 = vmatpush3.bf16.xpose.msk.msra.mxu1 %vm4341_vm1, %v3270_v1  ;;  %v3635_v9 = vunpack.i.h.bf16 %v3633_v8  ;;  %v3634_v10 = vunpack.i.l.bf16 %v3633_v8  ;;  %p3890_p2 = por %p3889_p1, %p3888_p12 }
 0xb67   : > { %3278 = vmatprep.subr.msk.bf16.mxu1 %vm4341_vm1, %v3276_v3 }
 0xb68   : > { %v3352_v11 = vpack.c.bf16 %v3635_v9, %v3634_v10  ;;  %p3891_p13 = pnand %p3890_p2, %p3884_p7 }
 0xb69   : > { %v3643_v13 = vpop.permute.xlu0 %3642 }
 0xb6a   : > { %v3644_v14 = vunpack.i.l.bf16 %v3643_v13 }
 0xb6d   : > { %v3653_v22 = vpop.permute.xlu0 %3652 }
 0xb6e   : > { %3281 = vmatpush3.bf16.xpose.msk.msra.mxu1 %vm4341_vm1, %v3276_v3  ;;  %v3655_v23 = vunpack.i.h.bf16 %v3653_v22  ;;  %v3654_v24 = vunpack.i.l.bf16 %v3653_v22 }
 0xb6f   : > { %3284 = vmatprep.subr.msk.bf16.mxu1 %vm4341_vm1, %v3282_v4 }
 0xb70   : > { %v3376_v46 = vpack.c.bf16 %v3655_v23, %v3654_v24 }
 0xb71   : > { %v3663_v53 = vpop.permute.xlu0 %3662 }
 0xb72   : > { %v3665_v31 = vunpack.i.h.bf16 %v3663_v53  ;;  %v3664_v32 = vunpack.i.l.bf16 %v3663_v53 }
 0xb74   : > { %v3398_v33 = vpack.c.bf16 %v3665_v31, %v3664_v32 }
 0xb75   : > { %2983 = vmatmul.mubr.msk.f32.vlgmr.msra.gmra.mrb[0].mxu1 %vm838_vm0, %v4411_v57  ;;  %v3300_v57 = vpack.c.bf16 %v4472_v48, %v4470_v47  ;;  %v3624_v47 = vunpack.i.l.bf16 %v3623_v41  ;;  %v3673_v55 = vpop.permute.xlu0 %3672 }
 0xb76   : > { %3287 = vmatpush3.bf16.xpose.msk.msra.mxu1 %vm4341_vm1, %v3282_v4  ;;  %3017 = vmatprep.mubr.msk.f32.mxu1 %vm838_vm0, %v4385_v19  ;;  %v3306_v19 = vpack.c.bf16 %v4476_v50, %v4474_v49  ;;  %v3628_v49 = vpop.permute.xlu1 %3627  ;;  %v3675_v56 = vunpack.i.h.bf16 %v3673_v55  ;;  %v3674_v45 = vunpack.i.l.bf16 %v3673_v55 }
 0xb77   : > { %3290 = vmatprep.subr.msk.bf16.mxu1 %vm4341_vm1, %v3288_v5  ;;  %v3340_v48 = vpack.c.bf16 %v3625_v42, %v3624_v47  ;;  %v3630_v50 = vunpack.i.h.bf16 %v3628_v49  ;;  %v3629_v6 = vunpack.i.l.bf16 %v3628_v49 }
 0xb78   : > { %v3410_v52 = vpack.c.bf16 %v3675_v56, %v3674_v45 }
 0xb79   : > { %v3346_v7 = vpack.c.bf16 %v3630_v50, %v3629_v6 }
 0xb7a   : > { %v3638_v38 = vpop.permute.xlu1 %3637 }
 0xb7b   : > { %v3639_v12 = vunpack.i.l.bf16 %v3638_v38 }
 0xb7e   : > { %3293 = vmatpush3.bf16.xpose.msk.msra.mxu1 %vm4341_vm1, %v3288_v5  ;;  %v3648_v16 = vpop.permute.xlu1 %3647 }
 0xb7f   : > { %3296 = vmatprep.subr.msk.bf16.mxu1 %vm4341_vm1, %v3294_v37  ;;  %v3650_v17 = vunpack.i.h.bf16 %v3648_v16  ;;  %v3649_v20 = vunpack.i.l.bf16 %v3648_v16 }
 0xb81   : > { %v3370_v21 = vpack.c.bf16 %v3650_v17, %v3649_v20 }
 0xb82   : > { %v3658_v25 = vpop.permute.xlu1 %3657 }
 0xb83   : > { %v3660_v28 = vunpack.i.h.bf16 %v3658_v25  ;;  %v3659_v29 = vunpack.i.l.bf16 %v3658_v25 }
 0xb85   : > { %v3382_v30 = vpack.c.bf16 %v3660_v28, %v3659_v29 }
 0xb86   : > { %3299 = vmatpush3.bf16.xpose.msk.msra.mxu1 %vm4341_vm1, %v3294_v37  ;;  %v3668_v39 = vpop.permute.xlu1 %3667 }
 0xb87   : > { %3302 = vmatprep.subr.msk.bf16.mxu1 %vm4341_vm1, %v3300_v57  ;;  %v3670_v43 = vunpack.i.h.bf16 %v3668_v39  ;;  %v3669_v51 = vunpack.i.l.bf16 %v3668_v39 }
 0xb89   : > { %v3404_v54 = vpack.c.bf16 %v3670_v43, %v3669_v51 }
 0xb8a   : > { %v3678_v58 = vpop.permute.xlu1 %3677 }
 0xb8b   : > { %v3680_v59 = vunpack.i.h.bf16 %v3678_v58  ;;  %v3679_v60 = vunpack.i.l.bf16 %v3678_v58 }
 0xb8d   : > { %v3416_v61 = vpack.c.bf16 %v3680_v59, %v3679_v60 }
 0xb8e   : > { %3305 = vmatpush3.bf16.xpose.msk.msra.mxu1 %vm4341_vm1, %v3300_v57  ;;  %v3688_v1 = vpop.permute.xlu1 %3687 }
 0xb8f   : > { %3308 = vmatprep.subr.msk.bf16.mxu1 %vm4341_vm1, %v3306_v19  ;;  %v3690_v2 = vunpack.i.h.bf16 %v3688_v1  ;;  %v3689_v3 = vunpack.i.l.bf16 %v3688_v1 }
 0xb91   : > { %v3428_v4 = vpack.c.bf16 %v3690_v2, %v3689_v3 }
 0xb96   : > { %3311 = vmatpush3.bf16.xpose.msk.msra.mxu1 %vm4341_vm1, %v3306_v19 }
 0xb97   : > { %3314 = vmatprep.subr.msk.bf16.mxu1 %vm4341_vm1, %v3312_v34 }
 0xb9e   : > { %3317 = vmatpush3.bf16.xpose.msk.msra.mxu1 %vm4341_vm1, %v3312_v34  ;;  %v3698_v34 = vpop.permute.xlu1 %3697 }
 0xb9f   : > { %3320 = vmatprep.subr.msk.bf16.mxu1 %vm4341_vm1, %v3318_v35 }
 0xba6   : > { %3323 = vmatpush3.bf16.xpose.msk.msra.mxu1 %vm4341_vm1, %v3318_v35  ;;  %v3700_v35 = vunpack.i.h.bf16 %v3698_v34 }
 0xba7   : > { %3326 = vmatprep.subr.msk.bf16.mxu1 %vm4341_vm1, %v3324_v40 }
 0xbae   : > { %3329 = vmatpush3.bf16.xpose.msk.msra.mxu1 %vm4341_vm1, %v3324_v40  ;;  %v3699_v40 = vunpack.i.l.bf16 %v3698_v34 }
 0xbaf   : > { %3342 = vmatprep.subr.msk.bf16.mxu1 %vm4341_vm1, %v3340_v48 }
 0xbb0   : > { %v3440_v41 = vpack.c.bf16 %v3700_v35, %v3699_v40 }
 0xbb5   : > { %3018 = vmatmul.mubr.msk.f32.vlgmr.msra.gmra.mrb[0].mxu1 %vm838_vm0, %v4383_v18  ;;  %v3640_v18 = vunpack.i.h.bf16 %v3638_v38 }
 0xbb6   : > { %3345 = vmatpush3.bf16.xpose.msk.msra.mxu1 %vm4341_vm1, %v3340_v48  ;;  %3066 = vmatprep.mubr.msk.f32.mxu1 %vm838_vm0, %v4440_v27  ;;  %v3645_v27 = vunpack.i.h.bf16 %v3643_v13 }
 0xbb7   : > { %3348 = vmatprep.subr.msk.bf16.mxu1 %vm4341_vm1, %v3346_v7  ;;  %v3358_v36 = vpack.c.bf16 %v3640_v18, %v3639_v12 }
 0xbb8   : > { %v3364_v15 = vpack.c.bf16 %v3645_v27, %v3644_v14 }
 0xbbe   : > { %3351 = vmatpush3.bf16.xpose.msk.msra.mxu1 %vm4341_vm1, %v3346_v7 }
 0xbbf   : > { %3354 = vmatprep.subr.msk.bf16.mxu1 %vm4341_vm1, %v3352_v11 }
 0xbc6   : > { %3357 = vmatpush3.bf16.xpose.msk.msra.mxu1 %vm4341_vm1, %v3352_v11 }
 0xbc7   : > { %3360 = vmatprep.subr.msk.bf16.mxu1 %vm4341_vm1, %v3358_v36 }
 0xbce   : > { %3363 = vmatpush3.bf16.xpose.msk.msra.mxu1 %vm4341_vm1, %v3358_v36 }
 0xbcf   : > { %3366 = vmatprep.subr.msk.bf16.mxu1 %vm4341_vm1, %v3364_v15 }
 0xbd6   : > { %3369 = vmatpush3.bf16.xpose.msk.msra.mxu1 %vm4341_vm1, %v3364_v15 }
 0xbd7   : > { %3372 = vmatprep.subr.msk.bf16.mxu1 %vm4341_vm1, %v3370_v21 }
 0xbde   : > { %3375 = vmatpush3.bf16.xpose.msk.msra.mxu1 %vm4341_vm1, %v3370_v21 }
 0xbdf   : > { %3378 = vmatprep.subr.msk.bf16.mxu1 %vm4341_vm1, %v3376_v46 }
 0xbe6   : > { %3381 = vmatpush3.bf16.xpose.msk.msra.mxu1 %vm4341_vm1, %v3376_v46 }
 0xbe7   : > { %3384 = vmatprep.subr.msk.bf16.mxu1 %vm4341_vm1, %v3382_v30 }
 0xbee   : > { %3387 = vmatpush3.bf16.xpose.msk.msra.mxu1 %vm4341_vm1, %v3382_v30 }
 0xbef   : > { %3400 = vmatprep.subr.msk.bf16.mxu1 %vm4341_vm1, %v3398_v33 }
 0xbf5   : > { %3067 = vmatmul.mubr.msk.f32.vlgmr.msra.gmra.mrb[0].mxu1 %vm838_vm0, %v4438_v26  ;;  %v3683_v26 = vpop.permute.xlu0 %3682 }
 0xbf6   : > { %3403 = vmatpush3.bf16.xpose.msk.msra.mxu1 %vm4341_vm1, %v3398_v33  ;;  %v3685_v62 = vunpack.i.h.bf16 %v3683_v26  ;;  %v3684_v63 = vunpack.i.l.bf16 %v3683_v26 }
 0xbf7   : > { %3406 = vmatprep.subr.msk.bf16.mxu1 %vm4341_vm1, %v3404_v54 }
 0xbf8   : > { %v3422_v0 = vpack.c.bf16 %v3685_v62, %v3684_v63 }
 0xbf9   : > { %v3693_v5 = vpop.permute.xlu0 %3692 }
 0xbfa   : > { %v3695_v37 = vunpack.i.h.bf16 %v3693_v5  ;;  %v3694_v57 = vunpack.i.l.bf16 %v3693_v5 }
 0xbfc   : > { %v3434_v19 = vpack.c.bf16 %v3695_v37, %v3694_v57 }
 0xbfe   : > { %3409 = vmatpush3.bf16.xpose.msk.msra.mxu1 %vm4341_vm1, %v3404_v54 }
 0xbff   : > { %3412 = vmatprep.subr.msk.bf16.mxu1 %vm4341_vm1, %v3410_v52 }
 0xc06   : > { %3415 = vmatpush3.bf16.xpose.msk.msra.mxu1 %vm4341_vm1, %v3410_v52 }
 0xc07   : > { %3418 = vmatprep.subr.msk.bf16.mxu1 %vm4341_vm1, %v3416_v61 }
 0xc0e   : > { %3421 = vmatpush3.bf16.xpose.msk.msra.mxu1 %vm4341_vm1, %v3416_v61 }
 0xc0f   : > { %3424 = vmatprep.subr.msk.bf16.mxu1 %vm4341_vm1, %v3422_v0 }
 0xc16   : > { %3427 = vmatpush3.bf16.xpose.msk.msra.mxu1 %vm4341_vm1, %v3422_v0 }
 0xc17   : > { %3430 = vmatprep.subr.msk.bf16.mxu1 %vm4341_vm1, %v3428_v4 }
 0xc1e   : > { %3433 = vmatpush3.bf16.xpose.msk.msra.mxu1 %vm4341_vm1, %v3428_v4 }
 0xc1f   : > { %3436 = vmatprep.subr.msk.bf16.mxu1 %vm4341_vm1, %v3434_v19 }
 0xc26   : > { %3439 = vmatpush3.bf16.xpose.msk.msra.mxu1 %vm4341_vm1, %v3434_v19 }
 0xc27   : > { %3442 = vmatprep.subr.msk.bf16.mxu1 %vm4341_vm1, %v3440_v41 }
 0xc2e   : > { %3445 = vmatpush3.bf16.xpose.msk.msra.mxu1 %vm4341_vm1, %v3440_v41 }
 0xc37   : > { %v3082_v42 = vpop.f32.mrb[20].mxu0 }
 0xc38   : > { %v2143_v47 = vpop.f32.mrb[21].mxu0 }
 0xc39   : > { %3115 = vmatprep.mubr.msk.f32.mxu1 %vm838_vm0, %v2143_v47 }
 0xc3a   : > { %3116 = vmatmul.mubr.msk.f32.vlgmr.msra.gmra.mrb[0].mxu1 %vm838_vm0, %v3082_v42 }
 0xc3b   : > { %3894 = shalt.err (!%p3891_p13)
}
 0xc3c   : > { %s3895_s20 = scalar_lea.hbm %s4720_s11, 1024  ;;  %s3899_s30 = scalar_lea.hbm %s4855_s15, 2048 }
 0xc3d   : > { %p3896_p9 = scmp.ne.s32.totalorder %s4720_s11, %s3895_s20  ;;  %p3900_p4 = scmp.lt.u32.totalorder %s4720_s11, %s4855_s15 }
 0xc3e   : > { %p3901_p8 = scmp.lt.u32.totalorder %s3899_s30, %s3895_s20  ;;  %p3903_p3 = scmp.lt.u32.totalorder %s3895_s20, %s4720_s11 }
 0xc3f   : > { %p3897_p0 = pnand %p3896_p9, %p4239_p10 }
 0xc40   : > { %p3902_p6 = por %p3901_p8, %p3900_p4 }
 0xc41   : > { %p3898_p11 = pneg %p3897_p0 }
 0xc42   : > { %p3904_p5 = por %p3903_p3, %p3902_p6 }
 0xc44   : > { %p3905_p7 = pnand %p3904_p5, %p3898_p11 }
 0xc46   : > { %3908 = shalt.err (!%p3905_p7)
}
 0xc47   : > { %s4831_s18 = smov 128   ;;  %s4001_s29 = smov 8   ;;  %v3737_v7 = vld [vmem:[%s4300_s8 + $0x8] sm:$0xff]  ;;  %v3738_v9 = vld [vmem:[%s4300_s8] sm:$0xff] }
 0xc48   : > { %3471 = dma.vmem_to_hbm [thread:$0]  (%p4239_p10), %s4722_s16, 1024, %s4720_s11, %s2350_s28, %s4831_s18, %s4831_s18, %s4001_s29  }
 0xc49   : > { %s4856_s14 = sld [smem:[#allocation22_spill]]  ;;  %s493_s30 = scalar_lea.vmem [#allocation11], %s2533_s17 }
 0xc4a   : > { %s2363_s27 = sshll.u32 %s493_s30, 4  ;;  %s2657_s19 = sshll.u32 %s4089_s25, 8  ;;  %s4758_s27 = int_to_ptr.vmem [resolvable:$true] %s2363_s27 }
 0xc4b   : > { %s4857_s28 = sld [smem:[#allocation23_spill]]  ;;  %s2345_s17 = scalar_lea.sflag [#allocation4], %s4294_s10 }
 0xc4c   : > { %s3909_s13 = scalar_lea.vmem %s4758_s27, 256  ;;  %s4002_s25 = smov [#allocation11]  }
 0xc4d   : > { %p3910_p12 = scmp.ne.s32.totalorder %s4758_s27, %s3909_s13 }
 0xc4f   : > { %v2647_v44 = vld [vmem:[%s4856_s14] ss:$0 sm:$0xff]  ;;  %p3911_p1 = pnand %p3910_p12, %p4239_p10  ;;  %s3913_s14 = sshll.u32 %s4002_s25, 4  ;;  %s3914_s14 = int_to_ptr.vmem [resolvable:$false] %s3913_s14 }
 0xc50   : > { %s3915_s18 = scalar_lea.vmem %s3914_s14, 512  ;;  %p3916_p13 = scmp.lt.s32.totalorder %s4758_s27, %s3914_s14 }
 0xc51   : > { %s4764_s20 = scalar_lea.hbm %s4857_s28, %s2657_s19  ;;  %p3912_p2 = pneg %p3911_p1 }
 0xc52   : > { %p3917_p9 = scmp.lt.s32.totalorder %s3915_s18, %s3909_s13 }
 0xc54   : > { %p3918_p0 = por %p3917_p9, %p3916_p13 }
 0xc56   : > { %p3919_p11 = pnand %p3918_p0, %p3912_p2 }
 0xd0d   : > { %v3117_v48 = vpop.f32.mrb[0].mxu1 }
 0xd0e   : > { %v2339_v49 = vadd.f32 %v3117_v48, %v2647_v44  ;;  %v2320_v50 = vpop.f32.mrb[1].mxu1 }
 0xd0f   : > { %v2338_v6 = vadd.f32 %v2647_v44, %v2320_v50 }
 0xd10   : > { %v2341_v8 = vadd.f32 %v3737_v7, %v2339_v49 }
 0xd11   : > { %v2340_v10 = vadd.f32 %v3738_v9, %v2338_v6 }
 0xd12   : > { %2343 = vst [vmem:[%s493_s30 + $0x8] sm:$0xff] %v2341_v8 }
 0xd13   : > { %2342 = vst [vmem:[%s493_s30] sm:$0xff] %v2340_v10 }
 0xd14   : > { %3922 = shalt.err (!%p3919_p11)
}
 0xd15   : > { %s3923_s8 = scalar_lea.hbm %s4764_s20, 256  ;;  %s3927_s16 = scalar_lea.hbm %s4857_s28, 512 }
 0xd16   : > { %p3924_p4 = scmp.ne.s32.totalorder %s4764_s20, %s3923_s8  ;;  %p3928_p3 = scmp.lt.u32.totalorder %s4764_s20, %s4857_s28 }
 0xd17   : > { %p3929_p5 = scmp.lt.u32.totalorder %s3927_s16, %s3923_s8  ;;  %p3931_p12 = scmp.lt.u32.totalorder %s3923_s8, %s4764_s20 }
 0xd18   : > { %p3925_p8 = pnand %p3924_p4, %p4239_p10 }
 0xd19   : > { %p3930_p7 = por %p3929_p5, %p3928_p3 }
 0xd1a   : > { %p3926_p6 = pneg %p3925_p8 }
 0xd1b   : > { %p3932_p1 = por %p3931_p12, %p3930_p7 }
 0xd1d   : > { %p3933_p2 = pnand %p3932_p1, %p3926_p6 }
 0xd1f   : > { %3936 = shalt.err (!%p3933_p2)
}
 0xd20   : > { %s4858_s18 = smov 128  }
 0xd21   : > { %3470 = dma.vmem_to_hbm [thread:$0]  (%p4239_p10), %s4758_s27, 256, %s4764_s20, %s2345_s17, %s4858_s18, %s4858_s18, %s4001_s29  }
 0xd22 PF: > { %s4859_s13 = sld [smem:[#allocation19_spill]]  ;;  %s4860_s14 = sld [smem:[#allocation20_spill]] }
 0xd23   : > { %p4862_p9 = scmp.ge.s32.totalorder %s3987_s24, 2 }
 0xd28   : > { %s2394_s30 = sand.u32 1, %s4859_s13   ;;  %p4861_p13 = scmp.ne.s32.totalorder %s4860_s14, 0 }
 0xd29   : > { %s2395_s8 = scalar_lea.sflag [#allocation4], %s2394_s30 }
 0xd2a   : > { %p3492_p0 = pnand %p4862_p9, %p4861_p13 }
 0xd2c   : > { %3966 = dma.done.wait (!%p3492_p0), %s2395_s8, 256  }
 0xd2d   : > { %3968 = vsyncadd (!%p3492_p0), %s2395_s8, 4294967040  ;;  %s2404_s12 = scalar_lea.sflag [#allocation13], %s2394_s30 }
 0xd2e   : > { %3970 = dma.done.wait (!%p3492_p0), %s2404_s12, 1024  }
 0xd2f   : > { %3972 = vsyncadd (!%p3492_p0), %s2404_s12, 4294966272  ;;  %s4863_s10 = smov %s4229_s21  ;;  %p31_p10 = scmp.ge.s32.totalorder %s4229_s21, 4  }
 0xd30   : > { %s4864_s21 = smov %s3979_s22  ;;  %s4865_s22 = smov %s3983_s23 }
 0xd31   : > { %s4866_s23 = smov %s4245_s26  ;;  %s4867_s24 = smov %s4863_s10 }
 0xd32   :  { %33 = sbr.rel (!%p31_p10) target bundleno = 14 (0xe), region = 145 }
 0xd39   :  { %2409 = vsyncpa [#allocation3], 1 }
 0xd3a   :  { %2411 = vsyncpa [#allocation3 + $0x1], 1 }
 0xd3b   :  { %2412 = vsyncpa [#allocation6], 1 }
 0xd3c   :  { %2413 = vsyncpa [#allocation9], 1 }
 0xd3d   :  { %2414 = vsyncpa [#allocation4], 1 }
 0xd3e   :  { %2416 = vsyncpa [#allocation4 + $0x1], 1 }
 0xd3f   :  { %2417 = vsyncpa [#allocation13], 1 }
 0xd40   :  { %2419 = vsyncpa [#allocation13 + $0x1], 1 }

</bundles_post_ra>
